<compile_context>
chip_gen: v6e
topology: v6e:2x2x1
jax: 0.10.0
libtpu: 0.0.40
codegen_flags: <defaults>
</compile_context>

<pallas_src>
import jax
import jax.numpy as jnp
from jax.experimental import pallas as pl
from jax.experimental.pallas import tpu as pltpu


# ----------------------------------------------------------------------------
# Fused kernel: conv3x3(+bias, ReLU) -> maxpool2x2 -> fc11(+ReLU) -> fc2.
# One batch-block of Bblk images per grid step.
# ----------------------------------------------------------------------------
def fused_cnn_kernel(p_ref, wc_ref, bc_ref, w1_ref, b1_ref, w2_ref, b2_ref,
                     o_ref):
    # p_ref : (Bblk, 27, 1024) bf16  phase-ordered im2col patches
    #          row r = cin*9 + kh*3 + kw, col = dh*512 + dw*256 + ho*16 + wo
    # wc_ref: (16, 27)  bf16   conv weight (cout, cin*kh*kw)
    # bc_ref: (16, 1)   f32    conv bias
    # w1_ref: (4096,128)bf16   fc11 weight, rows in torch flatten order
    #                          c*256 + ho*16 + wo  (VMEM-resident, constant idx)
    # b1_ref: (1, 128)  f32    fc11 bias
    # w2_ref: (128,128) bf16   fc2 weight (transposed, out-features padded ->128)
    # b2_ref: (1, 128)  f32    fc2 bias (padded)
    # o_ref : (1, Bblk, 128) f32 output slab for this batch-block
    bblk = p_ref.shape[0]
    wc = wc_ref[...]
    bc = bc_ref[...]

    # --- conv + pool per image (static unroll, Bblk <= 8) ---------------------
    pooled_imgs = []
    for b in range(bblk):
        # conv 3x3 as one MXU matmul: (16,27) @ (27,1024) -> (16,1024) f32
        conv = jnp.dot(wc, p_ref[b], preferred_element_type=jnp.float32)
        conv = jnp.maximum(conv + bc, 0.0)                       # bias + ReLU
        # 2x2/2 maxpool: elementwise max of the 4 contiguous phase blocks
        pooled = jnp.maximum(
            jnp.maximum(conv[:, 0:256], conv[:, 256:512]),
            jnp.maximum(conv[:, 512:768], conv[:, 768:1024]))    # (16, 256)
        pooled_imgs.append(pooled.astype(jnp.bfloat16))

    # --- fc11 as ONE (Bblk,4096)@(4096,128) matmul ----------------------------
    # Stack to (Bblk,16,256) (channel on sublanes), then lay the channels out
    # along lanes via 16 static slices + a lane-axis concat -> (Bblk, 4096) in
    # exactly torch's flatten order c*256 + ho*16 + wo.
    acts = jnp.stack(pooled_imgs, axis=0)                        # (Bblk,16,256)
    act = jnp.concatenate([acts[:, c, :] for c in range(16)], axis=1)

    h = jnp.dot(act, w1_ref[...], preferred_element_type=jnp.float32)
    h = jnp.maximum(h + b1_ref[...], 0.0)                        # (Bblk, 128)

    # --- fc2 (output features padded to 128 for a lane-dense store) ----------
    out = jnp.dot(h.astype(jnp.bfloat16), w2_ref[...],
                  preferred_element_type=jnp.float32) + b2_ref[...]
    o_ref[0] = out                                               # (Bblk, 128)


# ----------------------------------------------------------------------------
# One-time weight preprocessing (kept OUT of the jitted per-call path).
# ----------------------------------------------------------------------------
def prepare_params(params):
    conv_w, conv_b, fc11_w, fc11_b, fc2_w, fc2_b = params
    wc = conv_w.reshape(16, 27).astype(jnp.bfloat16)              # (cout, cin*kh*kw)
    bc = conv_b.reshape(16, 1).astype(jnp.float32)
    # Kernel's activation flatten order equals torch's (c*256 + ho*16 + wo),
    # so fc11 weight is simply transposed: (4096, 128).
    w1 = fc11_w.T.astype(jnp.bfloat16)
    b1 = fc11_b.reshape(1, 128).astype(jnp.float32)
    w2 = jnp.pad(fc2_w.T.astype(jnp.float32), ((0, 0), (0, 8))).astype(jnp.bfloat16)
    b2 = jnp.pad(fc2_b.astype(jnp.float32), (0, 8)).reshape(1, 128)
    return wc, bc, w1, b1, w2, b2


# ----------------------------------------------------------------------------
# Forward wrapper (jitted): phase-ordered im2col (bf16), one pallas_call, slice.
# ----------------------------------------------------------------------------
def simple_cnn2_forward(x, prepped):
    wc, bc, w1, b1, w2, b2 = prepped
    B = x.shape[0]
    # Batch block: grow M on the FC matmuls with B, but keep >= 2 grid steps
    # (v7x has 2 TensorCores) whenever B >= 2.
    bblk = min(8, max(1, B // 2))
    n_blocks = pl.cdiv(B, bblk)
    b_pad = n_blocks * bblk

    x = x.astype(jnp.float32)
    # Zero-pad spatial dims (torch padding=1) and build phase-ordered im2col:
    # patches[b, cin*9 + kh*3 + kw, dh*512 + dw*256 + ho*16 + wo]
    #   = x_pad[b, cin, 2*ho + dh + kh, 2*wo + dw + kw]
    x_pad = jnp.pad(x, ((0, 0), (0, 0), (1, 1), (1, 1)))          # (B, 3, 34, 34)
    taps = [x_pad[:, :, kh:kh + 32, kw:kw + 32]
            for kh in range(3) for kw in range(3)]                # 9 x (B,3,32,32)
    pt = jnp.stack(taps, axis=2)                                  # (B,3,9,32,32)
    pt = pt.reshape(B, 3, 9, 16, 2, 16, 2)                        # (b,cin,tap,ho,dh,wo,dw)
    pt = pt.transpose(0, 1, 2, 4, 6, 3, 5)                        # (b,cin,tap,dh,dw,ho,wo)
    patches = pt.reshape(B, 27, 1024).astype(jnp.bfloat16)        # bf16 halves HBM traffic
    if b_pad != B:
        patches = jnp.pad(patches, ((0, b_pad - B), (0, 0), (0, 0)))

    out = pl.pallas_call(
        fused_cnn_kernel,
        out_shape=jax.ShapeDtypeStruct((n_blocks, bblk, 128), jnp.float32),
        grid=(n_blocks,),
        in_specs=[
            pl.BlockSpec((bblk, 27, 1024), lambda i: (i, 0, 0)),   # patches (pipelined)
            pl.BlockSpec((16, 27), lambda i: (0, 0)),              # conv weight (resident)
            pl.BlockSpec((16, 1), lambda i: (0, 0)),               # conv bias
            pl.BlockSpec((4096, 128), lambda i: (0, 0)),           # fc11 weight (VMEM-resident,
                                                                   #  DMA'd once for the grid)
            pl.BlockSpec((1, 128), lambda i: (0, 0)),              # fc11 bias
            pl.BlockSpec((128, 128), lambda i: (0, 0)),            # fc2 weight
            pl.BlockSpec((1, 128), lambda i: (0, 0)),              # fc2 bias
        ],
        out_specs=pl.BlockSpec((1, bblk, 128), lambda i: (i, 0, 0)),
        compiler_params=pltpu.CompilerParams(
            dimension_semantics=("parallel",)),
    )(patches, wc, bc, w1, b1, w2, b2)

    return out.reshape(b_pad, 128)[:B, :120]


# ----------------------------------------------------------------------------
# Pure-JAX reference and parameter init (for the built-in correctness check).
# ----------------------------------------------------------------------------
def reference_forward(x, params):
    conv_w, conv_b, fc11_w, fc11_b, fc2_w, fc2_b = params
    y = jax.lax.conv_general_dilated(
        x, conv_w, window_strides=(1, 1), padding=((1, 1), (1, 1)),
        dimension_numbers=("NCHW", "OIHW", "NCHW"))
    y = jax.nn.relu(y + conv_b[None, :, None, None])
    y = jax.lax.reduce_window(y, -jnp.inf, jax.lax.max,
                              (1, 1, 2, 2), (1, 1, 2, 2), "VALID")
    y = y.reshape(y.shape[0], -1)
    y = jax.nn.relu(y @ fc11_w.T + fc11_b)
    return y @ fc2_w.T + fc2_b


def init_params():
    key = jax.random.PRNGKey(0)
    kcw, kcb, k1w, k1b, k2w, k2b = jax.random.split(key, 6)
    conv_w = 0.1 * jax.random.normal(kcw, (16, 3, 3, 3), jnp.float32)   # OIHW
    conv_b = 0.1 * jax.random.normal(kcb, (16,), jnp.float32)
    fc11_w = 0.02 * jax.random.normal(k1w, (128, 16 * 16 * 16), jnp.float32)
    fc11_b = 0.02 * jax.random.normal(k1b, (128,), jnp.float32)
    fc2_w = 0.02 * jax.random.normal(k2w, (120, 128), jnp.float32)
    fc2_b = 0.02 * jax.random.normal(k2b, (120,), jnp.float32)
    return conv_w, conv_b, fc11_w, fc11_b, fc2_w, fc2_b


if __name__ == "__main__":
    params = init_params()
    prepped = prepare_params(params)      # weight prep hoisted out of the jitted path
    x = jax.random.normal(jax.random.PRNGKey(0), (2, 3, 32, 32), jnp.float32)

    fwd = jax.jit(simple_cnn2_forward)
    out = jax.block_until_ready(fwd(x, prepped))
    assert out.shape == (2, 120) and out.dtype == jnp.float32

    ref = jax.block_until_ready(reference_forward(x, params))
    assert jnp.allclose(out, ref, atol=1e-2, rtol=1e-2), \
        f"max abs err = {jnp.max(jnp.abs(out - ref))}"

    print("KERNEL_OK")
</pallas_src>

<mosaic_0001>
module attributes {stable_mosaic.version = 11 : i64} {
  func.func @fused_cnn_kernel(%arg0: i32, %arg1: memref<1x27x1024xbf16, #tpu.memory_space<vmem>>, %arg2: memref<16x27xbf16, #tpu.memory_space<vmem>>, %arg3: memref<16x1xf32, #tpu.memory_space<vmem>>, %arg4: memref<4096x128xbf16, #tpu.memory_space<vmem>>, %arg5: memref<1x128xf32, #tpu.memory_space<vmem>>, %arg6: memref<128x128xbf16, #tpu.memory_space<vmem>>, %arg7: memref<1x128xf32, #tpu.memory_space<vmem>>, %arg8: memref<1x1x128xf32, #tpu.memory_space<vmem>>) attributes {dimension_semantics = [#tpu.dimension_semantics<parallel>], iteration_bounds = array<i64: 2>, scalar_prefetch = 0 : i64, scratch_operands = 0 : i64, tpu.core_type = #tpu.core_type<tc>, window_params = [{transform_indices = @transform_0, window_bounds = array<i64: 1, 27, 1024>}, {pipeline_mode = #tpu.pipeline_mode<synchronous>, transform_indices = @transform_1, window_bounds = array<i64: 16, 27>}, {pipeline_mode = #tpu.pipeline_mode<synchronous>, transform_indices = @transform_2, window_bounds = array<i64: 16, 1>}, {pipeline_mode = #tpu.pipeline_mode<synchronous>, transform_indices = @transform_3, window_bounds = array<i64: 4096, 128>}, {pipeline_mode = #tpu.pipeline_mode<synchronous>, transform_indices = @transform_4, window_bounds = array<i64: 1, 128>}, {pipeline_mode = #tpu.pipeline_mode<synchronous>, transform_indices = @transform_5, window_bounds = array<i64: 128, 128>}, {pipeline_mode = #tpu.pipeline_mode<synchronous>, transform_indices = @transform_6, window_bounds = array<i64: 1, 128>}, {transform_indices = @transform_7, window_bounds = array<i64: 1, 1, 128>}]} {
    %c0 = arith.constant 0 : index
    %c0_0 = arith.constant 0 : index
    %0 = vector.load %arg2[%c0, %c0_0] : memref<16x27xbf16, #tpu.memory_space<vmem>>, vector<16x27xbf16>
    %c0_1 = arith.constant 0 : index
    %c0_2 = arith.constant 0 : index
    %1 = vector.load %arg3[%c0_1, %c0_2] : memref<16x1xf32, #tpu.memory_space<vmem>>, vector<16x1xf32>
    %c0_3 = arith.constant 0 : index
    %c0_4 = arith.constant 0 : index
    %c0_5 = arith.constant 0 : index
    %2 = vector.load %arg1[%c0_3, %c0_4, %c0_5] : memref<1x27x1024xbf16, #tpu.memory_space<vmem>>, vector<1x27x1024xbf16>
    %3 = vector.shape_cast %2 : vector<1x27x1024xbf16> to vector<27x1024xbf16>
    %cst = arith.constant dense<0.000000e+00> : vector<16x1024xf32>
    %4 = tpu.matmul %0, %3, %cst {dimension_numbers = #tpu.dot_dimension_numbers<[1], [0], [0], [1], [0, 0, 1, 1], [], []>} : vector<16x27xbf16>, vector<27x1024xbf16>, vector<16x1024xf32> -> vector<16x1024xf32>
    %5 = vector.broadcast %1 : vector<16x1xf32> to vector<16x1024xf32>
    %6 = arith.addf %4, %5 : vector<16x1024xf32>
    %cst_6 = arith.constant 0.000000e+00 : f32
    %7 = vector.broadcast %cst_6 : f32 to vector<16x1024xf32>
    %8 = arith.maximumf %6, %7 : vector<16x1024xf32>
    %9 = vector.extract_strided_slice %8 {offsets = [0, 0], sizes = [16, 256], strides = [1, 1]} : vector<16x1024xf32> to vector<16x256xf32>
    %10 = vector.extract_strided_slice %8 {offsets = [0, 256], sizes = [16, 256], strides = [1, 1]} : vector<16x1024xf32> to vector<16x256xf32>
    %11 = arith.maximumf %9, %10 : vector<16x256xf32>
    %12 = vector.extract_strided_slice %8 {offsets = [0, 512], sizes = [16, 256], strides = [1, 1]} : vector<16x1024xf32> to vector<16x256xf32>
    %13 = vector.extract_strided_slice %8 {offsets = [0, 768], sizes = [16, 256], strides = [1, 1]} : vector<16x1024xf32> to vector<16x256xf32>
    %14 = arith.maximumf %12, %13 : vector<16x256xf32>
    %15 = arith.maximumf %11, %14 : vector<16x256xf32>
    %16 = arith.truncf %15 : vector<16x256xf32> to vector<16x256xbf16>
    %17 = vector.shape_cast %16 : vector<16x256xbf16> to vector<1x16x256xbf16>
    %18 = vector.extract_strided_slice %17 {offsets = [0, 0, 0], sizes = [1, 1, 256], strides = [1, 1, 1]} : vector<1x16x256xbf16> to vector<1x1x256xbf16>
    %19 = vector.shape_cast %18 : vector<1x1x256xbf16> to vector<1x256xbf16>
    %20 = vector.extract_strided_slice %17 {offsets = [0, 1, 0], sizes = [1, 1, 256], strides = [1, 1, 1]} : vector<1x16x256xbf16> to vector<1x1x256xbf16>
    %21 = vector.shape_cast %20 : vector<1x1x256xbf16> to vector<1x256xbf16>
    %22 = vector.extract_strided_slice %17 {offsets = [0, 2, 0], sizes = [1, 1, 256], strides = [1, 1, 1]} : vector<1x16x256xbf16> to vector<1x1x256xbf16>
    %23 = vector.shape_cast %22 : vector<1x1x256xbf16> to vector<1x256xbf16>
    %24 = vector.extract_strided_slice %17 {offsets = [0, 3, 0], sizes = [1, 1, 256], strides = [1, 1, 1]} : vector<1x16x256xbf16> to vector<1x1x256xbf16>
    %25 = vector.shape_cast %24 : vector<1x1x256xbf16> to vector<1x256xbf16>
    %26 = vector.extract_strided_slice %17 {offsets = [0, 4, 0], sizes = [1, 1, 256], strides = [1, 1, 1]} : vector<1x16x256xbf16> to vector<1x1x256xbf16>
    %27 = vector.shape_cast %26 : vector<1x1x256xbf16> to vector<1x256xbf16>
    %28 = vector.extract_strided_slice %17 {offsets = [0, 5, 0], sizes = [1, 1, 256], strides = [1, 1, 1]} : vector<1x16x256xbf16> to vector<1x1x256xbf16>
    %29 = vector.shape_cast %28 : vector<1x1x256xbf16> to vector<1x256xbf16>
    %30 = vector.extract_strided_slice %17 {offsets = [0, 6, 0], sizes = [1, 1, 256], strides = [1, 1, 1]} : vector<1x16x256xbf16> to vector<1x1x256xbf16>
    %31 = vector.shape_cast %30 : vector<1x1x256xbf16> to vector<1x256xbf16>
    %32 = vector.extract_strided_slice %17 {offsets = [0, 7, 0], sizes = [1, 1, 256], strides = [1, 1, 1]} : vector<1x16x256xbf16> to vector<1x1x256xbf16>
    %33 = vector.shape_cast %32 : vector<1x1x256xbf16> to vector<1x256xbf16>
    %34 = vector.extract_strided_slice %17 {offsets = [0, 8, 0], sizes = [1, 1, 256], strides = [1, 1, 1]} : vector<1x16x256xbf16> to vector<1x1x256xbf16>
    %35 = vector.shape_cast %34 : vector<1x1x256xbf16> to vector<1x256xbf16>
    %36 = vector.extract_strided_slice %17 {offsets = [0, 9, 0], sizes = [1, 1, 256], strides = [1, 1, 1]} : vector<1x16x256xbf16> to vector<1x1x256xbf16>
    %37 = vector.shape_cast %36 : vector<1x1x256xbf16> to vector<1x256xbf16>
    %38 = vector.extract_strided_slice %17 {offsets = [0, 10, 0], sizes = [1, 1, 256], strides = [1, 1, 1]} : vector<1x16x256xbf16> to vector<1x1x256xbf16>
    %39 = vector.shape_cast %38 : vector<1x1x256xbf16> to vector<1x256xbf16>
    %40 = vector.extract_strided_slice %17 {offsets = [0, 11, 0], sizes = [1, 1, 256], strides = [1, 1, 1]} : vector<1x16x256xbf16> to vector<1x1x256xbf16>
    %41 = vector.shape_cast %40 : vector<1x1x256xbf16> to vector<1x256xbf16>
    %42 = vector.extract_strided_slice %17 {offsets = [0, 12, 0], sizes = [1, 1, 256], strides = [1, 1, 1]} : vector<1x16x256xbf16> to vector<1x1x256xbf16>
    %43 = vector.shape_cast %42 : vector<1x1x256xbf16> to vector<1x256xbf16>
    %44 = vector.extract_strided_slice %17 {offsets = [0, 13, 0], sizes = [1, 1, 256], strides = [1, 1, 1]} : vector<1x16x256xbf16> to vector<1x1x256xbf16>
    %45 = vector.shape_cast %44 : vector<1x1x256xbf16> to vector<1x256xbf16>
    %46 = vector.extract_strided_slice %17 {offsets = [0, 14, 0], sizes = [1, 1, 256], strides = [1, 1, 1]} : vector<1x16x256xbf16> to vector<1x1x256xbf16>
    %47 = vector.shape_cast %46 : vector<1x1x256xbf16> to vector<1x256xbf16>
    %48 = vector.extract_strided_slice %17 {offsets = [0, 15, 0], sizes = [1, 1, 256], strides = [1, 1, 1]} : vector<1x16x256xbf16> to vector<1x1x256xbf16>
    %49 = vector.shape_cast %48 : vector<1x1x256xbf16> to vector<1x256xbf16>
    %50 = tpu.concatenate %19, %21, %23, %25, %27, %29, %31, %33, %35, %37, %39, %41, %43, %45, %47, %49 in 1 : vector<1x256xbf16>, vector<1x256xbf16>, vector<1x256xbf16>, vector<1x256xbf16>, vector<1x256xbf16>, vector<1x256xbf16>, vector<1x256xbf16>, vector<1x256xbf16>, vector<1x256xbf16>, vector<1x256xbf16>, vector<1x256xbf16>, vector<1x256xbf16>, vector<1x256xbf16>, vector<1x256xbf16>, vector<1x256xbf16>, vector<1x256xbf16> -> vector<1x4096xbf16>
    %c0_7 = arith.constant 0 : index
    %c0_8 = arith.constant 0 : index
    %51 = vector.load %arg4[%c0_7, %c0_8] : memref<4096x128xbf16, #tpu.memory_space<vmem>>, vector<4096x128xbf16>
    %cst_9 = arith.constant dense<0.000000e+00> : vector<1x128xf32>
    %52 = tpu.matmul %50, %51, %cst_9 {dimension_numbers = #tpu.dot_dimension_numbers<[1], [0], [0], [1], [0, 0, 1, 1], [], []>} : vector<1x4096xbf16>, vector<4096x128xbf16>, vector<1x128xf32> -> vector<1x128xf32>
    %c0_10 = arith.constant 0 : index
    %c0_11 = arith.constant 0 : index
    %53 = vector.load %arg5[%c0_10, %c0_11] : memref<1x128xf32, #tpu.memory_space<vmem>>, vector<1x128xf32>
    %54 = arith.addf %52, %53 : vector<1x128xf32>
    %cst_12 = arith.constant 0.000000e+00 : f32
    %55 = vector.broadcast %cst_12 : f32 to vector<1x128xf32>
    %56 = arith.maximumf %54, %55 : vector<1x128xf32>
    %57 = arith.truncf %56 : vector<1x128xf32> to vector<1x128xbf16>
    %c0_13 = arith.constant 0 : index
    %c0_14 = arith.constant 0 : index
    %58 = vector.load %arg6[%c0_13, %c0_14] : memref<128x128xbf16, #tpu.memory_space<vmem>>, vector<128x128xbf16>
    %cst_15 = arith.constant dense<0.000000e+00> : vector<1x128xf32>
    %59 = tpu.matmul %57, %58, %cst_15 {dimension_numbers = #tpu.dot_dimension_numbers<[1], [0], [0], [1], [0, 0, 1, 1], [], []>} : vector<1x128xbf16>, vector<128x128xbf16>, vector<1x128xf32> -> vector<1x128xf32>
    %c0_16 = arith.constant 0 : index
    %c0_17 = arith.constant 0 : index
    %60 = vector.load %arg7[%c0_16, %c0_17] : memref<1x128xf32, #tpu.memory_space<vmem>>, vector<1x128xf32>
    %61 = arith.addf %59, %60 : vector<1x128xf32>
    %c0_18 = arith.constant 0 : index
    %c0_19 = arith.constant 0 : index
    %c0_20 = arith.constant 0 : index
    %62 = vector.load %arg8[%c0_18, %c0_19, %c0_20] : memref<1x1x128xf32, #tpu.memory_space<vmem>>, vector<1x1x128xf32>
    %63 = vector.shape_cast %62 : vector<1x1x128xf32> to vector<1x128xf32>
    %64 = vector.shape_cast %61 : vector<1x128xf32> to vector<1x1x128xf32>
    tpu.vector_store %arg8[%c0_18, %c0_19, %c0_20], %64 {strides = array<i32>} : memref<1x1x128xf32, #tpu.memory_space<vmem>>, vector<1x1x128xf32>,
    return
  }
  func.func @transform_0(%arg0: i32) -> (i32, i32, i32) {
    %c0_i32 = arith.constant 0 : i32
    %c0_i32_0 = arith.constant 0 : i32
    %c0_i32_1 = arith.constant 0 : i32
    return %arg0, %c0_i32, %c0_i32_0 : i32, i32, i32
  }
  func.func @transform_1(%arg0: i32) -> (i32, i32) {
    %c0_i32 = arith.constant 0 : i32
    %c0_i32_0 = arith.constant 0 : i32
    %c0_i32_1 = arith.constant 0 : i32
    return %c0_i32, %c0_i32_0 : i32, i32
  }
  func.func @transform_2(%arg0: i32) -> (i32, i32) {
    %c0_i32 = arith.constant 0 : i32
    %c0_i32_0 = arith.constant 0 : i32
    %c0_i32_1 = arith.constant 0 : i32
    return %c0_i32, %c0_i32_0 : i32, i32
  }
  func.func @transform_3(%arg0: i32) -> (i32, i32) {
    %c0_i32 = arith.constant 0 : i32
    %c0_i32_0 = arith.constant 0 : i32
    %c0_i32_1 = arith.constant 0 : i32
    return %c0_i32, %c0_i32_0 : i32, i32
  }
  func.func @transform_4(%arg0: i32) -> (i32, i32) {
    %c0_i32 = arith.constant 0 : i32
    %c0_i32_0 = arith.constant 0 : i32
    %c0_i32_1 = arith.constant 0 : i32
    return %c0_i32, %c0_i32_0 : i32, i32
  }
  func.func @transform_5(%arg0: i32) -> (i32, i32) {
    %c0_i32 = arith.constant 0 : i32
    %c0_i32_0 = arith.constant 0 : i32
    %c0_i32_1 = arith.constant 0 : i32
    return %c0_i32, %c0_i32_0 : i32, i32
  }
  func.func @transform_6(%arg0: i32) -> (i32, i32) {
    %c0_i32 = arith.constant 0 : i32
    %c0_i32_0 = arith.constant 0 : i32
    %c0_i32_1 = arith.constant 0 : i32
    return %c0_i32, %c0_i32_0 : i32, i32
  }
  func.func @transform_7(%arg0: i32) -> (i32, i32, i32) {
    %c0_i32 = arith.constant 0 : i32
    %c0_i32_0 = arith.constant 0 : i32
    %c0_i32_1 = arith.constant 0 : i32
    return %arg0, %c0_i32, %c0_i32_0 : i32, i32, i32
  }
}

</mosaic_0001>

<bundles_post_ra>
// kernel: simple_cnn2_forward.1
= control target key start
LH: loop header
LB: loop body
LE: loop exit
PB: predicated region body
PF: predicated region fallthrough
CT: control target
= control target key end

     0   :  { %12 = vsyncpa [#allocation3], 0  ;;  %s5616_s0 = inlined_call_operand.vmem [shape: bf16[2,27,1024], index: 0, kind: input, shape index: {}]   ;;  %s5617_s1 = inlined_call_operand.vmem [shape: bf16[16,27], index: 1, kind: input, shape index: {}]   ;;  %s5618_s2 = inlined_call_operand.vmem [shape: f32[16,1], index: 2, kind: input, shape index: {}]   ;;  %s5619_s3 = inlined_call_operand.vmem [shape: bf16[4096,128], index: 3, kind: input, shape index: {}]   ;;  %s5620_s4 = inlined_call_operand.vmem [shape: f32[1,128], index: 4, kind: input, shape index: {}]   ;;  %s5621_s5 = inlined_call_operand.vmem [shape: bf16[128,128], index: 5, kind: input, shape index: {}]   ;;  %s5622_s6 = inlined_call_operand.vmem [shape: f32[1,128], index: 6, kind: input, shape index: {}]   ;;  %s5623_s7 = inlined_call_operand.hbm [shape: f32[2,1,128], index: 7, kind: output, shape index: {}]  }
   0x1   :  { %14 = vsyncpa [#allocation3 + $0x1], 0  ;;  %s4641_s24 = smov 0   ;;  %s4643_s25 = smov 0  }
   0x2   :  { %s4645_s26 = smov 0   ;;  %s4647_s27 = smov 0  }
   0x3 LB: > { %s4662_s28 = sadd.s32 4294967295, %s4594_s27   ;;  %s3549_s29 = sadd.s32 4294967294, %s4594_s27   ;;  %s4594_s27 = sphi %s4647_s27, %s5629_s27   ;;  %s4590_s26 = sphi %s4645_s26, %s5628_s26   ;;  %s4586_s25 = sphi %s4643_s25, %s5627_s25   ;;  %s4582_s24 = sphi %s4641_s24, %s5626_s24  }
   0x4   : > { %s4666_s30 = sadd.s32 1, %s4594_s27   ;;  %s179_s8 = sadd.s32 1, %s4590_s26 }
   0x5   : > { %s176_s9 = ssub.s32 %s4594_s27, %s4666_s30  ;;  %p189_p0 = scmp.ne.s32.totalorder %s4590_s26, %s4586_s25 }
   0x6   : > { %p177_p1 = scmp.eq.s32.totalorder %s176_s9, 0  ;;  %p190_p2 = scmp.eq.s32.totalorder %s4662_s28, 1 }
   0x7   : > { %p195_p3 = scmp.ne.s32.totalorder %s4586_s25, %s4582_s24  ;;  %p196_p4 = scmp.eq.s32.totalorder %s3549_s29, 1 }
   0x8   : > { %s4677_s10 = scalar_select %p177_p1, %s4590_s26, %s179_s8  }
   0x9   : > { %p4679_p5 = por %p190_p2, %p189_p0  ;;  %p4683_p6 = por %p196_p4, %p195_p3 }
   0xa   : > { %p3552_p7 = scmp.ge.s32.totalorder %s4594_s27, 1  ;;  %p240_p8 = scmp.lt.s32.totalorder %s4594_s27, 3 }
   0xc   : > { %p241_p9 = pnand %p3552_p7, %p240_p8 }
   0xd   : > { %p271_p10 = scmp.lt.s32.totalorder (!%p241_p9), %s4662_s28, 1  ;;  %s269_s22 = sand.u32 (!%p241_p9), 1, %s4586_s25  }
   0xe   : > { %244 = sbr.rel (%p241_p9) target bundleno = 909 (0x38d), region = 48  ;;  %s3840_s8 = sshll.u32 (!%p241_p9), %s4662_s28, 4 }
   0xf   : > { %s270_s9 = scalar_lea.vmem (!%p241_p9), [#allocation2], %s269_s22  ;;  %s3482_s17 = scalar_lea.sflag (!%p241_p9), [#allocation3], %s269_s22 }
  0x13   : > { %vm388_vm0 = vcmask 1044480   ;;  %v4596_v0 = vmov 0   ;;  %s272_s13 = scalar_select %p271_p10, %s4662_s28, 1  ;;  %vm389_vm1 = vcmask 1045504   ;;  %v4597_v1 = vmov 65535   ;;  %v279_v3 = vld [vmem:[%s5618_s2] sm:$0xff] }
  0x14   : > { %448 = vmatprep.mubr.bf16.mxu1 %v4596_v0  ;;  %4268 = vset.pattern.permute.xlu0 %v4596_v0  ;;  %v390_v2 = vsel %vm388_vm0, 4294967295, %v4597_v1  ;;  %v280_v4 = vld [vmem:[%s5618_s2 + $0x8] sm:$0xff]  ;;  %vm384_vm2 = vcmask 220160   ;;  %v4269_v24 = vld [vmem:[%s5617_s1] sm:$0xff]   ;;  %v4270_v47 = vld [vmem:[%s5619_s3 + $0x78] sm:$0xff]   ;;  %vm4599_vm3 = vmmov 0  }
  0x15   : > { %299 = vperm.xlu0 %4268, %v279_v3   ;;  %s3843_s16 = sshll.u32 %s272_s13, 7  ;;  %v391_v7 = vsel %vm389_vm1, %v390_v2, 0  ;;  %v4271_v48 = vld [vmem:[%s5619_s3 + $0x38] sm:$0xff]   ;;  %3844 = vmatprep.subr.bf16.mxu0 %v4270_v47  ;;  %v4274_v51 = vld [vmem:[%s5619_s3 + $0x70] sm:$0xff]   ;;  %v4278_v55 = vld [vmem:[%s5619_s3 + $0x68] sm:$0xff]   ;;  %s3494_s13 = sshll.u32 %s270_s9, 4  ;;  %s5577_s13 = int_to_ptr.vmem [resolvable:$true] %s3494_s13 }
  0x16   : > { %s4702_s21 = scalar_lea.vmem %s5616_s0, %s3843_s16  ;;  %v4272_v49 = vld [vmem:[%s5619_s3 + $0xf8] sm:$0xff]   ;;  %3845 = vmatpush3.bf16.msra.mxu0 %v4271_v48  ;;  %v4275_v52 = vld [vmem:[%s5619_s3 + $0x30] sm:$0xff]   ;;  %v4279_v56 = vld [vmem:[%s5619_s3 + $0x28] sm:$0xff]   ;;  %s5575_s16 = scalar_lea.hbm %s5623_s7, %s3840_s8 }
  0x17   : > { %v289_v5 = vld [vmem:[%s4702_s21 + $0x40] sm:$0xff]  ;;  %v290_v12 = vld [vmem:[%s4702_s21 + $0x48] sm:$0xff]  ;;  %v291_v22 = vld [vmem:[%s4702_s21 + $0x50] sm:$0xff]  ;;  %3846 = vmatprep.subr.bf16.mxu0 %v4274_v51  ;;  %s4534_s18 = scalar_lea.vmem %s5577_s13, 16  ;;  %s4600_s28 = smov [#allocation2]  }
  0x18   : > { %v293_v6 = vld [vmem:[%s4702_s21 + $0x60] sm:$0x33]  ;;  %v294_v13 = vld [vmem:[%s4702_s21 + $0x68] sm:$0x33]  ;;  %v295_v23 = vld [vmem:[%s4702_s21 + $0x70] sm:$0x33]  ;;  %p4535_p11 = scmp.ne.s32.totalorder %s5577_s13, %s4534_s18 }
  0x19   : > { %v281_v8 = vld [vmem:[%s4702_s21] sm:$0xff]  ;;  %v3565_v9 = vcombine.high %v289_v5, %v293_v6  ;;  %v3564_v10 = vcombine.low %v289_v5, %v293_v6  ;;  %304 = vperm.xlu0 %4268, %v280_v4   ;;  %v3567_v17 = vcombine.high %v290_v12, %v294_v13  ;;  %v3566_v19 = vcombine.low %v290_v12, %v294_v13  ;;  %v282_v20 = vld [vmem:[%s4702_s21 + $0x8] sm:$0xff]  ;;  %v283_v31 = vld [vmem:[%s4702_s21 + $0x10] sm:$0xff]  ;;  %s4538_s19 = sshll.u32 %s4600_s28, 4  ;;  %s4539_s19 = int_to_ptr.vmem [resolvable:$false] %s4538_s19 }
  0x1a   : > { %v285_v11 = vld [vmem:[%s4702_s21 + $0x20] sm:$0xff]  ;;  %v286_v21 = vld [vmem:[%s4702_s21 + $0x28] sm:$0xff]  ;;  %v3569_v28 = vcombine.high %v291_v22, %v295_v23  ;;  %v3568_v30 = vcombine.low %v291_v22, %v295_v23  ;;  %v287_v32 = vld [vmem:[%s4702_s21 + $0x30] sm:$0xff]  ;;  %3847 = vmatpush3.bf16.msra.mxu0 %v4275_v52  ;;  %p4536_p12 = pnand %p4535_p11, %p4679_p5  ;;  %s4540_s20 = scalar_lea.vmem %s4539_s19, 32 }
  0x1b   : > { %v396_v14 = vand.u32 %v3565_v9, %v391_v7  ;;  %v393_v15 = vand.u32 %v3564_v10, %v391_v7  ;;  %v3557_v16 = vcombine.high %v281_v8, %v285_v11  ;;  %v3556_v18 = vcombine.low %v281_v8, %v285_v11  ;;  %v292_v33 = vld [vmem:[%s4702_s21 + $0x58] sm:$0xff]  ;;  %v4276_v53 = vld [vmem:[%s5619_s3 + $0xf0] sm:$0xff]   ;;  %3848 = vmatprep.subr.bf16.mxu0 %v4278_v55  ;;  %v4280_v57 = vld [vmem:[%s5619_s3 + $0xe8] sm:$0xff]   ;;  %p4541_p0 = scmp.lt.s32.totalorder %s5577_s13, %s4539_s19  ;;  %p4542_p1 = scmp.lt.s32.totalorder %s4540_s20, %s4534_s18 }
  0x1c   : > { %v402_v25 = vand.u32 %v3567_v17, %v391_v7  ;;  %v399_v26 = vand.u32 %v3566_v19, %v391_v7  ;;  %v3559_v27 = vcombine.high %v282_v20, %v286_v21  ;;  %v3558_v29 = vcombine.low %v282_v20, %v286_v21  ;;  %v296_v34 = vld [vmem:[%s4702_s21 + $0x78] sm:$0x33]  ;;  %v4277_v54 = vld [vmem:[%s5619_s3 + $0xb0] sm:$0xff]   ;;  %v4281_v58 = vld [vmem:[%s5619_s3 + $0xa8] sm:$0xff]   ;;  %p4537_p13 = pneg %p4536_p12 }
  0x1d   : > { %428 = vmatprep.subr.bf16.mxu1 %v396_v14  ;;  %v408_v35 = vand.u32 %v3569_v28, %v391_v7  ;;  %v405_v36 = vand.u32 %v3568_v30, %v391_v7  ;;  %v3561_v37 = vcombine.high %v283_v31, %v287_v32  ;;  %v3571_v38 = vcombine.high %v292_v33, %v296_v34  ;;  %v284_v41 = vld [vmem:[%s4702_s21 + $0x18] sm:$0xff]  ;;  %v4282_v59 = vld [vmem:[%s5619_s3 + $0x60] sm:$0xff]   ;;  %v4290_v3 = vld [vmem:[%s5619_s3 + $0x50] sm:$0xff]   ;;  %p4543_p2 = por %p4542_p1, %p4541_p0 }
  0x1e   : > { %429 = vmatpush1.bf16.msra.mxu1 %v393_v15  ;;  %v3560_v39 = vcombine.low %v283_v31, %v287_v32  ;;  %v3570_v40 = vcombine.low %v292_v33, %v296_v34  ;;  %v288_v42 = vld [vmem:[%s4702_s21 + $0x38] sm:$0xff]  ;;  %3849 = vmatpush3.bf16.msra.mxu0 %v4279_v56  ;;  %v4283_v60 = vld [vmem:[%s5619_s3 + $0x20] sm:$0xff]   ;;  %v4291_v4 = vld [vmem:[%s5619_s3 + $0x10] sm:$0xff]  }
  0x1f   : > { %430 = vmatprep.subr.bf16.mxu1 %v3557_v16  ;;  %v414_v43 = vand.u32 %v3571_v38, %v391_v7  ;;  %v3563_v45 = vcombine.high %v284_v41, %v288_v42  ;;  %v3562_v46 = vcombine.low %v284_v41, %v288_v42  ;;  %v4273_v50 = vld [vmem:[%s5619_s3 + $0xb8] sm:$0xff]   ;;  %3850 = vmatprep.subr.bf16.mxu0 %v4282_v59  ;;  %v4284_v61 = vld [vmem:[%s5619_s3 + $0xe0] sm:$0xff]   ;;  %v4292_v5 = vld [vmem:[%s5619_s3 + $0xd0] sm:$0xff]   ;;  %p4544_p3 = pnand %p4543_p2, %p4537_p13 }
  0x20   : > { %v411_v44 = vand.u32 %v3570_v40, %v391_v7  ;;  %v4285_v62 = vld [vmem:[%s5619_s3 + $0xa0] sm:$0xff]   ;;  %v4286_v63 = vld [vmem:[%s5619_s3 + $0x58] sm:$0xff]   ;;  %v4293_v6 = vld [vmem:[%s5619_s3 + $0x90] sm:$0xff]  }
  0x21   : > { %v4288_v1 = vld [vmem:[%s5619_s3 + $0xd8] sm:$0xff]   ;;  %v4294_v7 = vld [vmem:[%s5619_s3 + $0x48] sm:$0xff]   ;;  %v4298_v11 = vld [vmem:[%s5619_s3 + $0x40] sm:$0xff]  }
  0x22   : > { %431 = vmatpush1.bf16.msra.mxu1 %v3556_v18  ;;  %3851 = vmatpush3.bf16.msra.mxu0 %v4283_v60  ;;  %v4289_v2 = vld [vmem:[%s5619_s3 + $0x98] sm:$0xff]   ;;  %v4295_v8 = vld [vmem:[%s5619_s3 + $0x8] sm:$0xff]   ;;  %v4299_v12 = vld [vmem:[%s5619_s3] sm:$0xff]  }
  0x23   : > { %471 = vmatprep.subr.bf16.mxu1 %v402_v25  ;;  %3852 = vmatprep.subr.bf16.mxu0 %v4286_v63  ;;  %v4296_v9 = vld [vmem:[%s5619_s3 + $0xc8] sm:$0xff]   ;;  %v4300_v13 = vld [vmem:[%s5619_s3 + $0xc0] sm:$0xff]   ;;  %v4302_v15 = vld [vmem:[%s5619_s3 + $0x178] sm:$0xff]  }
  0x24   : > { %v4297_v10 = vld [vmem:[%s5619_s3 + $0x88] sm:$0xff]   ;;  %v4301_v14 = vld [vmem:[%s5619_s3 + $0x80] sm:$0xff]   ;;  %v4304_v16 = vld [vmem:[%s5619_s3 + $0x1f8] sm:$0xff]  }
  0x25   : > { %3572 = vmatmul.mubr.msk.bf16.vlgmr.msra.gmra.mxu1 %vm384_vm2, %v4269_v24 }
  0x26   : > { %472 = vmatpush1.bf16.msra.mxu1 %v399_v26  ;;  %491 = vmatprep.mubr.bf16.mxu1 %v4596_v0 }
  0x27   : > { %473 = vmatprep.subr.bf16.mxu1 %v3559_v27 }
  0x2a   : > { %474 = vmatpush1.bf16.msra.mxu1 %v3558_v29 }
  0x2b   : > { %514 = vmatprep.subr.bf16.mxu1 %v408_v35 }
  0x2d   : > { %3573 = vmatmul.mubr.msk.bf16.vlgmr.msra.gmra.mxu1 %vm384_vm2, %v4269_v24 }
  0x2e   : > { %515 = vmatpush1.bf16.msra.mxu1 %v405_v36  ;;  %534 = vmatprep.mubr.bf16.mxu1 %v4596_v0 }
  0x2f   : > { %516 = vmatprep.subr.bf16.mxu1 %v3561_v37 }
  0x32   : > { %517 = vmatpush1.bf16.msra.mxu1 %v3560_v39 }
  0x33   : > { %557 = vmatprep.subr.bf16.mxu1 %v414_v43 }
  0x35   : > { %3574 = vmatmul.mubr.msk.bf16.vlgmr.msra.gmra.mxu1 %vm384_vm2, %v4269_v24 }
  0x36   : > { %558 = vmatpush1.bf16.msra.mxu1 %v411_v44  ;;  %577 = vmatprep.mubr.bf16.mxu1 %v4596_v0  ;;  %v4287_v0 = vld [vmem:[%s5619_s3 + $0x18] sm:$0xff]  }
  0x37   : > { %559 = vmatprep.subr.bf16.mxu1 %v3563_v45  ;;  %3853 = vmatpush3.bf16.msra.mxu0 %v4287_v0 }
  0x38   : > { %3854 = vmatprep.subr.bf16.mxu0 %v4290_v3 }
  0x3a   : > { %560 = vmatpush1.bf16.msra.mxu1 %v3562_v46 }
  0x3b   : > { %3866 = vmatprep.subr.bf16.mxu1 %v4272_v49  ;;  %3855 = vmatpush3.bf16.msra.mxu0 %v4291_v4 }
  0x3c   : > { %3856 = vmatprep.subr.bf16.mxu0 %v4294_v7 }
  0x3d   : > { %3575 = vmatmul.mubr.msk.bf16.vlgmr.msra.gmra.mxu1 %vm384_vm2, %v4269_v24 }
  0x3e   : > { %3867 = vmatpush3.bf16.msra.mxu1 %v4273_v50 }
  0x3f   : > { %3868 = vmatprep.subr.bf16.mxu1 %v4276_v53  ;;  %3857 = vmatpush3.bf16.msra.mxu0 %v4295_v8 }
  0x40   : > { %3858 = vmatprep.subr.bf16.mxu0 %v4298_v11 }
  0x42   : > { %3869 = vmatpush3.bf16.msra.mxu1 %v4277_v54 }
  0x43   : > { %3870 = vmatprep.subr.bf16.mxu1 %v4280_v57  ;;  %3859 = vmatpush3.bf16.msra.mxu0 %v4299_v12 }
  0x44   : > { %3888 = vmatprep.subr.bf16.mxu0 %v4302_v15 }
  0x46   : > { %3871 = vmatpush3.bf16.msra.mxu1 %v4281_v58 }
  0x47   : > { %3872 = vmatprep.subr.bf16.mxu1 %v4284_v61 }
  0x4a   : > { %3873 = vmatpush3.bf16.msra.mxu1 %v4285_v62 }
  0x4b   : > { %3874 = vmatprep.subr.bf16.mxu1 %v4288_v1 }
  0x4e   : > { %3875 = vmatpush3.bf16.msra.mxu1 %v4289_v2 }
  0x4f   : > { %3876 = vmatprep.subr.bf16.mxu1 %v4292_v5 }
  0x52   : > { %3877 = vmatpush3.bf16.msra.mxu1 %v4293_v6 }
  0x53   : > { %3878 = vmatprep.subr.bf16.mxu1 %v4296_v9 }
  0x56   : > { %3879 = vmatpush3.bf16.msra.mxu1 %v4297_v10 }
  0x57   : > { %3880 = vmatprep.subr.bf16.mxu1 %v4300_v13 }
  0x5a   : > { %3881 = vmatpush3.bf16.msra.mxu1 %v4301_v14 }
  0x5b   : > { %3910 = vmatprep.subr.bf16.mxu1 %v4304_v16 }
  0x90   : > { %v300_v25 = vpop.permute.xlu0 %299 }
  0x94   : > { %v305_v29 = vpop.permute.xlu0 %304 }
  0xe5   : > { %v450_v17 = vpop.f32.mrf.mxu1 }
  0xe6   : > { %v451_v31 = vadd.f32 %v450_v17, %v300_v25  ;;  %v4303_v17 = vld [vmem:[%s5619_s3 + $0x138] sm:$0xff]  }
  0xe7   : > { %v452_v18 = vpop.f32.mrf.mxu1 }
  0xe8   : > { %v588_v41 = vmax.f32 %v451_v31, 0.0  ;;  %v453_v45 = vadd.f32 %v452_v18, %v300_v25  ;;  %v4313_v31 = vld [vmem:[%s5619_s3 + $0x1a8] sm:$0xff]  }
  0xe9   : > { %v454_v19 = vpop.f32.mrf.mxu1 }
  0xea   : > { %v455_v34 = vadd.f32 %v454_v19, %v305_v29  ;;  %v589_v63 = vmax.f32 %v453_v45, 0.0  ;;  %v4327_v45 = vld [vmem:[%s5619_s3 + $0x108] sm:$0xff]  }
  0xeb   : > { %v456_v20 = vpop.f32.mrf.mxu1 }
  0xec   : > { %v457_v46 = vadd.f32 %v456_v20, %v305_v29  ;;  %v596_v50 = vmax.f32 %v455_v34, 0.0  ;;  %v4305_v20 = vld [vmem:[%s5619_s3 + $0x1b8] sm:$0xff]  }
  0xed   : > { %v493_v21 = vpop.f32.mrf.mxu1  ;;  %v4318_v34 = vld [vmem:[%s5619_s3 + $0x158] sm:$0xff]  }
  0xee   : > { %v494_v36 = vadd.f32 %v493_v21, %v300_v25  ;;  %v597_v0 = vmax.f32 %v457_v46, 0.0  ;;  %v4306_v21 = vld [vmem:[%s5619_s3 + $0x170] sm:$0xff]   ;;  %v4330_v46 = vld [vmem:[%s5619_s3 + $0x140] sm:$0xff]  }
  0xef   : > { %v495_v22 = vpop.f32.mrf.mxu1 }
  0xf0   : > { %v496_v37 = vadd.f32 %v495_v22, %v300_v25  ;;  %v590_v54 = vmax.f32 %v494_v36, 0.0  ;;  %v4320_v36 = vld [vmem:[%s5619_s3 + $0x1d8] sm:$0xff]  }
  0xf1   : > { %v497_v23 = vpop.f32.mrf.mxu1 }
  0xf2   : > { %v498_v32 = vadd.f32 %v497_v23, %v305_v29  ;;  %v591_v55 = vmax.f32 %v496_v37, 0.0  ;;  %v604_v7 = vmax.f32 %v588_v41, %v590_v54  ;;  %v4308_v23 = vld [vmem:[%s5619_s3 + $0x1f0] sm:$0xff]   ;;  %v4319_v37 = vld [vmem:[%s5619_s3 + $0x118] sm:$0xff]  }
  0xf3   : > { %v499_v24 = vpop.f32.mrf.mxu1  ;;  %v4323_v41 = vld [vmem:[%s5619_s3 + $0x110] sm:$0xff]  }
  0xf4   : > { %v500_v38 = vadd.f32 %v499_v24, %v305_v29  ;;  %v598_v47 = vmax.f32 %v498_v32, 0.0  ;;  %v605_v8 = vmax.f32 %v589_v63, %v591_v55  ;;  %v4316_v32 = vld [vmem:[%s5619_s3 + $0x1e0] sm:$0xff]   ;;  %v4338_v55 = vld [vmem:[%s5619_s3 + $0x270] sm:$0xff]  }
  0xf5   : > { %v536_v26 = vpop.f32.mrf.mxu1  ;;  %v4341_v63 = vld [vmem:[%s5619_s3 + $0x2b0] sm:$0xff]  }
  0xf6   : > { %v537_v39 = vadd.f32 %v536_v26, %v300_v25  ;;  %v599_v56 = vmax.f32 %v500_v38, 0.0  ;;  %v606_v1 = vmax.f32 %v596_v50, %v598_v47  ;;  %v4310_v26 = vld [vmem:[%s5619_s3 + $0x168] sm:$0xff]   ;;  %v4322_v38 = vld [vmem:[%s5619_s3 + $0x150] sm:$0xff]   ;;  %v4334_v50 = vld [vmem:[%s5619_s3 + $0x278] sm:$0xff]  }
  0xf7   : > { %v538_v27 = vpop.f32.mrf.mxu1  ;;  %v4329_v47 = vld [vmem:[%s5619_s3 + $0x188] sm:$0xff]  }
  0xf8   : > { %v539_v42 = vadd.f32 %v538_v27, %v300_v25  ;;  %v592_v57 = vmax.f32 %v537_v39, 0.0  ;;  %v607_v9 = vmax.f32 %v597_v0, %v599_v56  ;;  %v4309_v27 = vld [vmem:[%s5619_s3 + $0x1b0] sm:$0xff]   ;;  %v4321_v39 = vld [vmem:[%s5619_s3 + $0x198] sm:$0xff]   ;;  %v4344_v0 = vld [vmem:[%s5619_s3 + $0x2e8] sm:$0xff]  }
  0xf9   : > { %v540_v28 = vpop.f32.mrf.mxu1 }
  0xfa   : > { %v541_v43 = vadd.f32 %v540_v28, %v305_v29  ;;  %v593_v59 = vmax.f32 %v539_v42, 0.0  ;;  %v4312_v28 = vld [vmem:[%s5619_s3 + $0x1e8] sm:$0xff]  }
  0xfb   : > { %v542_v30 = vpop.f32.mrf.mxu1  ;;  %v4326_v42 = vld [vmem:[%s5619_s3 + $0x148] sm:$0xff]  }
  0xfc   : > { %v543_v51 = vadd.f32 %v542_v30, %v305_v29  ;;  %v600_v60 = vmax.f32 %v541_v43, 0.0  ;;  %v4314_v30 = vld [vmem:[%s5619_s3 + $0x160] sm:$0xff]   ;;  %v4325_v43 = vld [vmem:[%s5619_s3 + $0x190] sm:$0xff]  }
  0xfd   : > { %v579_v33 = vpop.f32.mrf.mxu1 }
  0xfe   : > { %v580_v35 = vadd.f32 %v579_v33, %v300_v25  ;;  %v601_v3 = vmax.f32 %v543_v51, 0.0  ;;  %v4315_v33 = vld [vmem:[%s5619_s3 + $0x120] sm:$0xff]  }
  0xff   : > { %v581_v40 = vpop.f32.mrf.mxu1  ;;  %v4333_v51 = vld [vmem:[%s5619_s3 + $0x180] sm:$0xff]  }
 0x100   : > { %v582_v44 = vadd.f32 %v581_v40, %v300_v25  ;;  %v594_v48 = vmax.f32 %v580_v35, 0.0  ;;  %v4307_v25 = vld [vmem:[%s5619_s3 + $0x130] sm:$0xff]   ;;  %v4317_v35 = vld [vmem:[%s5619_s3 + $0x1a0] sm:$0xff]  }
 0x101   : > { %v583_v49 = vpop.f32.mrf.mxu1  ;;  %v4324_v40 = vld [vmem:[%s5619_s3 + $0x1d0] sm:$0xff]  }
 0x102   : > { %v595_v52 = vmax.f32 %v582_v44, 0.0  ;;  %v584_v53 = vadd.f32 %v583_v49, %v305_v29  ;;  %v608_v2 = vmax.f32 %v592_v57, %v594_v48  ;;  %v4328_v44 = vld [vmem:[%s5619_s3 + $0x1c8] sm:$0xff]   ;;  %v4332_v48 = vld [vmem:[%s5619_s3 + $0x1c0] sm:$0xff]   ;;  %v4337_v57 = vld [vmem:[%s5619_s3 + $0x2b8] sm:$0xff]  }
 0x103   : > { %v585_v58 = vpop.f32.mrf.mxu1  ;;  %v4331_v49 = vld [vmem:[%s5619_s3 + $0x100] sm:$0xff]  }
 0x104   : > { %v602_v61 = vmax.f32 %v584_v53, 0.0  ;;  %v586_v62 = vadd.f32 %v585_v58, %v305_v29  ;;  %v609_v4 = vmax.f32 %v593_v59, %v595_v52  ;;  %v612_v12 = vmax.f32 %v604_v7, %v608_v2  ;;  %v4311_v29 = vld [vmem:[%s5619_s3 + $0x128] sm:$0xff]   ;;  %v4336_v52 = vld [vmem:[%s5619_s3 + $0x2f8] sm:$0xff]   ;;  %v4340_v59 = vld [vmem:[%s5619_s3 + $0x2f0] sm:$0xff]  }
 0x105   : > { %v4335_v53 = vld [vmem:[%s5619_s3 + $0x238] sm:$0xff]   ;;  %v4346_v2 = vld [vmem:[%s5619_s3 + $0x260] sm:$0xff]  }
 0x106   : > { %v610_v5 = vmax.f32 %v600_v60, %v602_v61  ;;  %v603_v6 = vmax.f32 %v586_v62, 0.0  ;;  %v613_v13 = vmax.f32 %v605_v8, %v609_v4  ;;  %v4339_v61 = vld [vmem:[%s5619_s3 + $0x230] sm:$0xff]   ;;  %v4342_v62 = vld [vmem:[%s5619_s3 + $0x268] sm:$0xff]   ;;  %v4348_v4 = vld [vmem:[%s5619_s3 + $0x2e0] sm:$0xff]  }
 0x107   : > { %v4349_v7 = vld [vmem:[%s5619_s3 + $0x2a0] sm:$0xff]   ;;  %v4352_v8 = vld [vmem:[%s5619_s3 + $0x2d8] sm:$0xff]  }
 0x108   : > { %v614_v10 = vmax.f32 %v606_v1, %v610_v5  ;;  %v611_v11 = vmax.f32 %v601_v3, %v603_v6  ;;  %v4343_v1 = vld [vmem:[%s5619_s3 + $0x228] sm:$0xff]   ;;  %v4347_v5 = vld [vmem:[%s5619_s3 + $0x220] sm:$0xff]   ;;  %v4350_v6 = vld [vmem:[%s5619_s3 + $0x258] sm:$0xff]  }
 0x109   : > { %v4345_v3 = vld [vmem:[%s5619_s3 + $0x2a8] sm:$0xff]  }
 0x10a   : > { %v615_v14 = vmax.f32 %v607_v9, %v611_v11  ;;  %v4832_v15 = vpack.c.bf16 %v614_v10, %v612_v12  ;;  %v4351_v9 = vld [vmem:[%s5619_s3 + $0x218] sm:$0xff]   ;;  %v4354_v10 = vld [vmem:[%s5619_s3 + $0x250] sm:$0xff]  }
 0x10b   : > { %v4353_v11 = vld [vmem:[%s5619_s3 + $0x298] sm:$0xff]   ;;  %v4356_v12 = vld [vmem:[%s5619_s3 + $0x2d0] sm:$0xff]  }
 0x10c   : > { %v4834_v16 = vpack.c.bf16 %v615_v14, %v613_v13  ;;  %v4852_v22 = vshrl.u32 %v4832_v15, 16  ;;  %v628_v54 = vrot.slane %v4832_v15, 1  ;;  %v4355_v13 = vld [vmem:[%s5619_s3 + $0x210] sm:$0xff]   ;;  %v4358_v14 = vld [vmem:[%s5619_s3 + $0x248] sm:$0xff]  }
 0x10e   : > { %2765 = vmatprep.mubr.bf16.mxu0 %v4834_v16  ;;  %v4841_v18 = vshrl.u32 %v4834_v16, 16  ;;  %v629_v19 = vrot.slane %v4834_v16, 1  ;;  %v637_v56 = vrot.slane %v4834_v16, 2  ;;  %v632_v58 = vrot.slane %v4852_v22, 1 }
 0x10f   : > { %2766 = vmatmul.mubr.bf16.vlgmr.msra.gmra.mxu0 %v4832_v15 }
 0x110   : > { %3889 = vmatpush3.bf16.msra.mxu0 %v4303_v17  ;;  %2805 = vmatprep.mubr.bf16.mxu1 %v4841_v18  ;;  %v633_v24 = vrot.slane %v4841_v18, 1  ;;  %v641_v60 = vrot.slane %v4841_v18, 2  ;;  %v4357_v17 = vld [vmem:[%s5619_s3 + $0x290] sm:$0xff]  }
 0x111   : > { %2845 = vmatprep.mubr.bf16.mxu0 %v629_v19  ;;  %2806 = vmatmul.mubr.bf16.vlgmr.msra.gmra.mxu1 %v4852_v22  ;;  %v4360_v19 = vld [vmem:[%s5619_s3 + $0x2c8] sm:$0xff]  }
 0x112   : > { %3911 = vmatpush3.bf16.msra.mxu1 %v4305_v20  ;;  %3890 = vmatprep.subr.bf16.mxu0 %v4306_v21  ;;  %v4359_v20 = vld [vmem:[%s5619_s3 + $0x208] sm:$0xff]   ;;  %v4362_v21 = vld [vmem:[%s5619_s3 + $0x240] sm:$0xff]  }
 0x113   : > { %2885 = vmatprep.mubr.bf16.mxu1 %v633_v24  ;;  %3912 = vmatprep.subr.bf16.mxu1 %v4308_v23  ;;  %v4361_v23 = vld [vmem:[%s5619_s3 + $0x288] sm:$0xff]   ;;  %v4364_v24 = vld [vmem:[%s5619_s3 + $0x2c0] sm:$0xff]  }
 0x114   : > { %3891 = vmatpush3.bf16.msra.mxu0 %v4307_v25  ;;  %v4363_v25 = vld [vmem:[%s5619_s3 + $0x200] sm:$0xff]  }
 0x115   : > { %3892 = vmatprep.subr.bf16.mxu0 %v4310_v26  ;;  %v4366_v26 = vld [vmem:[%s5619_s3 + $0x378] sm:$0xff]  }
 0x116   : > { %3913 = vmatpush3.bf16.msra.mxu1 %v4309_v27  ;;  %v4365_v27 = vld [vmem:[%s5619_s3 + $0x280] sm:$0xff]  }
 0x117   : > { %3914 = vmatprep.subr.bf16.mxu1 %v4312_v28  ;;  %v4368_v28 = vld [vmem:[%s5619_s3 + $0x3f8] sm:$0xff]  }
 0x118   : > { %3893 = vmatpush3.bf16.msra.mxu0 %v4311_v29  ;;  %v4367_v29 = vld [vmem:[%s5619_s3 + $0x338] sm:$0xff]  }
 0x119   : > { %3894 = vmatprep.subr.bf16.mxu0 %v4314_v30  ;;  %v636_v30 = vrot.slane %v4832_v15, 2 }
 0x11a   : > { %3915 = vmatpush3.bf16.msra.mxu1 %v4313_v31  ;;  %v4370_v31 = vld [vmem:[%s5619_s3 + $0x370] sm:$0xff]  }
 0x11b   : > { %3916 = vmatprep.subr.bf16.mxu1 %v4316_v32  ;;  %v645_v32 = vrot.slane %v4834_v16, 3 }
 0x11c   : > { %3895 = vmatpush3.bf16.msra.mxu0 %v4315_v33  ;;  %v4369_v33 = vld [vmem:[%s5619_s3 + $0x3b8] sm:$0xff]  }
 0x11d   : > { %3896 = vmatprep.subr.bf16.mxu0 %v4318_v34  ;;  %v640_v34 = vrot.slane %v4852_v22, 2 }
 0x11e   : > { %3917 = vmatpush3.bf16.msra.mxu1 %v4317_v35  ;;  %v4372_v35 = vld [vmem:[%s5619_s3 + $0x3f0] sm:$0xff]  }
 0x11f   : > { %3918 = vmatprep.subr.bf16.mxu1 %v4320_v36  ;;  %v649_v36 = vrot.slane %v4841_v18, 3 }
 0x120   : > { %3897 = vmatpush3.bf16.msra.mxu0 %v4319_v37  ;;  %v4371_v37 = vld [vmem:[%s5619_s3 + $0x330] sm:$0xff]  }
 0x121   : > { %3898 = vmatprep.subr.bf16.mxu0 %v4322_v38  ;;  %v4374_v38 = vld [vmem:[%s5619_s3 + $0x368] sm:$0xff]  }
 0x122   : > { %3919 = vmatpush3.bf16.msra.mxu1 %v4321_v39  ;;  %v4373_v39 = vld [vmem:[%s5619_s3 + $0x3b0] sm:$0xff]  }
 0x123   : > { %3920 = vmatprep.subr.bf16.mxu1 %v4324_v40  ;;  %v4376_v40 = vld [vmem:[%s5619_s3 + $0x3e8] sm:$0xff]  }
 0x124   : > { %3899 = vmatpush3.bf16.msra.mxu0 %v4323_v41  ;;  %v4375_v41 = vld [vmem:[%s5619_s3 + $0x328] sm:$0xff]  }
 0x125   : > { %3900 = vmatprep.subr.bf16.mxu0 %v4326_v42  ;;  %v4378_v42 = vld [vmem:[%s5619_s3 + $0x360] sm:$0xff]  }
 0x126   : > { %3921 = vmatpush3.bf16.msra.mxu1 %v4325_v43  ;;  %v4377_v43 = vld [vmem:[%s5619_s3 + $0x3a8] sm:$0xff]  }
 0x127   : > { %3922 = vmatprep.subr.bf16.mxu1 %v4328_v44  ;;  %v4380_v44 = vld [vmem:[%s5619_s3 + $0x3e0] sm:$0xff]  }
 0x128   : > { %3901 = vmatpush3.bf16.msra.mxu0 %v4327_v45  ;;  %v4379_v45 = vld [vmem:[%s5619_s3 + $0x320] sm:$0xff]  }
 0x129   : > { %3902 = vmatprep.subr.bf16.mxu0 %v4330_v46  ;;  %v4382_v46 = vld [vmem:[%s5619_s3 + $0x358] sm:$0xff]  }
 0x12a   : > { %3923 = vmatpush3.bf16.msra.mxu1 %v4329_v47  ;;  %v4381_v47 = vld [vmem:[%s5619_s3 + $0x3a0] sm:$0xff]  }
 0x12b   : > { %3924 = vmatprep.subr.bf16.mxu1 %v4332_v48  ;;  %v4384_v48 = vld [vmem:[%s5619_s3 + $0x3d8] sm:$0xff]  }
 0x12c   : > { %3903 = vmatpush3.bf16.msra.mxu0 %v4331_v49  ;;  %v4383_v49 = vld [vmem:[%s5619_s3 + $0x318] sm:$0xff]  }
 0x12d   : > { %3932 = vmatprep.subr.bf16.mxu0 %v4334_v50  ;;  %v4386_v50 = vld [vmem:[%s5619_s3 + $0x350] sm:$0xff]  }
 0x12e   : > { %3925 = vmatpush3.bf16.msra.mxu1 %v4333_v51  ;;  %v4385_v51 = vld [vmem:[%s5619_s3 + $0x398] sm:$0xff]  }
 0x12f   : > { %2846 = vmatmul.mubr.bf16.vlgmr.msra.gmra.mxu0 %v628_v54  ;;  %3954 = vmatprep.subr.bf16.mxu1 %v4336_v52  ;;  %v4388_v52 = vld [vmem:[%s5619_s3 + $0x3d0] sm:$0xff]   ;;  %v4390_v54 = vld [vmem:[%s5619_s3 + $0x348] sm:$0xff]  }
 0x130   : > { %3933 = vmatpush3.bf16.msra.mxu0 %v4335_v53  ;;  %2925 = vmatprep.mubr.bf16.mxu0 %v637_v56  ;;  %v4387_v53 = vld [vmem:[%s5619_s3 + $0x310] sm:$0xff]   ;;  %v4392_v56 = vld [vmem:[%s5619_s3 + $0x3c8] sm:$0xff]  }
 0x131   : > { %2886 = vmatmul.mubr.bf16.vlgmr.msra.gmra.mxu1 %v632_v58  ;;  %3934 = vmatprep.subr.bf16.mxu0 %v4338_v55  ;;  %v4389_v55 = vld [vmem:[%s5619_s3 + $0x390] sm:$0xff]   ;;  %v4394_v58 = vld [vmem:[%s5619_s3 + $0x340] sm:$0xff]  }
 0x132   : > { %3955 = vmatpush3.bf16.msra.mxu1 %v4337_v57  ;;  %2965 = vmatprep.mubr.bf16.mxu1 %v641_v60  ;;  %v4391_v57 = vld [vmem:[%s5619_s3 + $0x308] sm:$0xff]   ;;  %v4396_v60 = vld [vmem:[%s5619_s3 + $0x3c0] sm:$0xff]  }
 0x133   : > { %3956 = vmatprep.subr.bf16.mxu1 %v4340_v59  ;;  %v4393_v59 = vld [vmem:[%s5619_s3 + $0x388] sm:$0xff]  }
 0x134   : > { %3935 = vmatpush3.bf16.msra.mxu0 %v4339_v61  ;;  %v4395_v61 = vld [vmem:[%s5619_s3 + $0x300] sm:$0xff]  }
 0x135   : > { %3936 = vmatprep.subr.bf16.mxu0 %v4342_v62  ;;  %v4398_v62 = vld [vmem:[%s5619_s3 + $0x478] sm:$0xff]  }
 0x136   : > { %3957 = vmatpush3.bf16.msra.mxu1 %v4341_v63  ;;  %v4397_v63 = vld [vmem:[%s5619_s3 + $0x380] sm:$0xff]  }
 0x137   : > { %3958 = vmatprep.subr.bf16.mxu1 %v4344_v0  ;;  %v4400_v0 = vld [vmem:[%s5619_s3 + $0x4f8] sm:$0xff]  }
 0x138   : > { %3937 = vmatpush3.bf16.msra.mxu0 %v4343_v1  ;;  %v4399_v1 = vld [vmem:[%s5619_s3 + $0x438] sm:$0xff]  }
 0x139   : > { %3938 = vmatprep.subr.bf16.mxu0 %v4346_v2  ;;  %v644_v2 = vrot.slane %v4832_v15, 3 }
 0x13a   : > { %3959 = vmatpush3.bf16.msra.mxu1 %v4345_v3  ;;  %v4402_v3 = vld [vmem:[%s5619_s3 + $0x470] sm:$0xff]  }
 0x13b   : > { %3960 = vmatprep.subr.bf16.mxu1 %v4348_v4  ;;  %v653_v4 = vrot.slane %v4834_v16, 4 }
 0x13c   : > { %3939 = vmatpush3.bf16.msra.mxu0 %v4347_v5  ;;  %v4401_v5 = vld [vmem:[%s5619_s3 + $0x4b8] sm:$0xff]  }
 0x13d   : > { %3940 = vmatprep.subr.bf16.mxu0 %v4350_v6  ;;  %v648_v6 = vrot.slane %v4852_v22, 3 }
 0x13e   : > { %3961 = vmatpush3.bf16.msra.mxu1 %v4349_v7  ;;  %v4404_v7 = vld [vmem:[%s5619_s3 + $0x4f0] sm:$0xff]  }
 0x13f   : > { %3962 = vmatprep.subr.bf16.mxu1 %v4352_v8  ;;  %v657_v8 = vrot.slane %v4841_v18, 4 }
 0x140   : > { %3941 = vmatpush3.bf16.msra.mxu0 %v4351_v9  ;;  %v4403_v9 = vld [vmem:[%s5619_s3 + $0x430] sm:$0xff]  }
 0x141   : > { %3942 = vmatprep.subr.bf16.mxu0 %v4354_v10  ;;  %v4406_v10 = vld [vmem:[%s5619_s3 + $0x468] sm:$0xff]  }
 0x142   : > { %3963 = vmatpush3.bf16.msra.mxu1 %v4353_v11  ;;  %v4405_v11 = vld [vmem:[%s5619_s3 + $0x4b0] sm:$0xff]  }
 0x143   : > { %3964 = vmatprep.subr.bf16.mxu1 %v4356_v12  ;;  %v4408_v12 = vld [vmem:[%s5619_s3 + $0x4e8] sm:$0xff]  }
 0x144   : > { %3943 = vmatpush3.bf16.msra.mxu0 %v4355_v13  ;;  %v4407_v13 = vld [vmem:[%s5619_s3 + $0x428] sm:$0xff]  }
 0x145   : > { %3944 = vmatprep.subr.bf16.mxu0 %v4358_v14  ;;  %v4410_v14 = vld [vmem:[%s5619_s3 + $0x460] sm:$0xff]  }
 0x146   : > { %3965 = vmatpush3.bf16.msra.mxu1 %v4357_v17  ;;  %v4409_v17 = vld [vmem:[%s5619_s3 + $0x4a8] sm:$0xff]  }
 0x147   : > { %3966 = vmatprep.subr.bf16.mxu1 %v4360_v19  ;;  %v4412_v19 = vld [vmem:[%s5619_s3 + $0x4e0] sm:$0xff]  }
 0x148   : > { %3945 = vmatpush3.bf16.msra.mxu0 %v4359_v20  ;;  %v4411_v20 = vld [vmem:[%s5619_s3 + $0x420] sm:$0xff]  }
 0x149   : > { %3946 = vmatprep.subr.bf16.mxu0 %v4362_v21  ;;  %v4414_v21 = vld [vmem:[%s5619_s3 + $0x458] sm:$0xff]  }
 0x14a   : > { %3967 = vmatpush3.bf16.msra.mxu1 %v4361_v23  ;;  %v4413_v23 = vld [vmem:[%s5619_s3 + $0x4a0] sm:$0xff]  }
 0x14b   : > { %3968 = vmatprep.subr.bf16.mxu1 %v4364_v24  ;;  %v4416_v24 = vld [vmem:[%s5619_s3 + $0x4d8] sm:$0xff]  }
 0x14c   : > { %3947 = vmatpush3.bf16.msra.mxu0 %v4363_v25  ;;  %v4415_v25 = vld [vmem:[%s5619_s3 + $0x418] sm:$0xff]  }
 0x14d   : > { %3976 = vmatprep.subr.bf16.mxu0 %v4366_v26  ;;  %v4418_v26 = vld [vmem:[%s5619_s3 + $0x450] sm:$0xff]  }
 0x14e   : > { %3969 = vmatpush3.bf16.msra.mxu1 %v4365_v27  ;;  %v4417_v27 = vld [vmem:[%s5619_s3 + $0x498] sm:$0xff]  }
 0x14f   : > { %2926 = vmatmul.mubr.bf16.vlgmr.msra.gmra.mxu0 %v636_v30  ;;  %3998 = vmatprep.subr.bf16.mxu1 %v4368_v28  ;;  %v4420_v28 = vld [vmem:[%s5619_s3 + $0x4d0] sm:$0xff]   ;;  %v4422_v30 = vld [vmem:[%s5619_s3 + $0x448] sm:$0xff]  }
 0x150   : > { %3977 = vmatpush3.bf16.msra.mxu0 %v4367_v29  ;;  %3005 = vmatprep.mubr.bf16.mxu0 %v645_v32  ;;  %v4419_v29 = vld [vmem:[%s5619_s3 + $0x410] sm:$0xff]   ;;  %v4424_v32 = vld [vmem:[%s5619_s3 + $0x4c8] sm:$0xff]  }
 0x151   : > { %2966 = vmatmul.mubr.bf16.vlgmr.msra.gmra.mxu1 %v640_v34  ;;  %3978 = vmatprep.subr.bf16.mxu0 %v4370_v31  ;;  %v4421_v31 = vld [vmem:[%s5619_s3 + $0x490] sm:$0xff]   ;;  %v4426_v34 = vld [vmem:[%s5619_s3 + $0x440] sm:$0xff]  }
 0x152   : > { %3999 = vmatpush3.bf16.msra.mxu1 %v4369_v33  ;;  %3045 = vmatprep.mubr.bf16.mxu1 %v649_v36  ;;  %v4423_v33 = vld [vmem:[%s5619_s3 + $0x408] sm:$0xff]   ;;  %v4428_v36 = vld [vmem:[%s5619_s3 + $0x4c0] sm:$0xff]  }
 0x153   : > { %4000 = vmatprep.subr.bf16.mxu1 %v4372_v35  ;;  %v4425_v35 = vld [vmem:[%s5619_s3 + $0x488] sm:$0xff]  }
 0x154   : > { %3979 = vmatpush3.bf16.msra.mxu0 %v4371_v37  ;;  %v4427_v37 = vld [vmem:[%s5619_s3 + $0x400] sm:$0xff]  }
 0x155   : > { %3980 = vmatprep.subr.bf16.mxu0 %v4374_v38  ;;  %v4430_v38 = vld [vmem:[%s5619_s3 + $0x578] sm:$0xff]  }
 0x156   : > { %4001 = vmatpush3.bf16.msra.mxu1 %v4373_v39  ;;  %v4429_v39 = vld [vmem:[%s5619_s3 + $0x480] sm:$0xff]  }
 0x157   : > { %4002 = vmatprep.subr.bf16.mxu1 %v4376_v40  ;;  %v4432_v40 = vld [vmem:[%s5619_s3 + $0x5f8] sm:$0xff]  }
 0x158   : > { %3981 = vmatpush3.bf16.msra.mxu0 %v4375_v41  ;;  %v4431_v41 = vld [vmem:[%s5619_s3 + $0x538] sm:$0xff]  }
 0x159   : > { %3982 = vmatprep.subr.bf16.mxu0 %v4378_v42  ;;  %v652_v42 = vrot.slane %v4832_v15, 4 }
 0x15a   : > { %4003 = vmatpush3.bf16.msra.mxu1 %v4377_v43  ;;  %v4434_v43 = vld [vmem:[%s5619_s3 + $0x570] sm:$0xff]  }
 0x15b   : > { %4004 = vmatprep.subr.bf16.mxu1 %v4380_v44  ;;  %v661_v44 = vrot.slane %v4834_v16, 5 }
 0x15c   : > { %3983 = vmatpush3.bf16.msra.mxu0 %v4379_v45  ;;  %v4433_v45 = vld [vmem:[%s5619_s3 + $0x5b8] sm:$0xff]  }
 0x15d   : > { %3984 = vmatprep.subr.bf16.mxu0 %v4382_v46  ;;  %v656_v46 = vrot.slane %v4852_v22, 4 }
 0x15e   : > { %4005 = vmatpush3.bf16.msra.mxu1 %v4381_v47  ;;  %v4436_v47 = vld [vmem:[%s5619_s3 + $0x5f0] sm:$0xff]  }
 0x15f   : > { %4006 = vmatprep.subr.bf16.mxu1 %v4384_v48  ;;  %v665_v48 = vrot.slane %v4841_v18, 5 }
 0x160   : > { %3985 = vmatpush3.bf16.msra.mxu0 %v4383_v49  ;;  %v4435_v49 = vld [vmem:[%s5619_s3 + $0x530] sm:$0xff]  }
 0x161   : > { %3986 = vmatprep.subr.bf16.mxu0 %v4386_v50  ;;  %v4438_v50 = vld [vmem:[%s5619_s3 + $0x568] sm:$0xff]  }
 0x162   : > { %4007 = vmatpush3.bf16.msra.mxu1 %v4385_v51  ;;  %v4437_v51 = vld [vmem:[%s5619_s3 + $0x5b0] sm:$0xff]  }
 0x163   : > { %4008 = vmatprep.subr.bf16.mxu1 %v4388_v52  ;;  %v4440_v52 = vld [vmem:[%s5619_s3 + $0x5e8] sm:$0xff]  }
 0x164   : > { %3987 = vmatpush3.bf16.msra.mxu0 %v4387_v53  ;;  %v4439_v53 = vld [vmem:[%s5619_s3 + $0x528] sm:$0xff]  }
 0x165   : > { %3988 = vmatprep.subr.bf16.mxu0 %v4390_v54  ;;  %v4442_v54 = vld [vmem:[%s5619_s3 + $0x560] sm:$0xff]  }
 0x166   : > { %4009 = vmatpush3.bf16.msra.mxu1 %v4389_v55  ;;  %v4441_v55 = vld [vmem:[%s5619_s3 + $0x5a8] sm:$0xff]  }
 0x167   : > { %4010 = vmatprep.subr.bf16.mxu1 %v4392_v56  ;;  %v4444_v56 = vld [vmem:[%s5619_s3 + $0x5e0] sm:$0xff]  }
 0x168   : > { %3989 = vmatpush3.bf16.msra.mxu0 %v4391_v57  ;;  %v4443_v57 = vld [vmem:[%s5619_s3 + $0x520] sm:$0xff]  }
 0x169   : > { %3990 = vmatprep.subr.bf16.mxu0 %v4394_v58  ;;  %v4446_v58 = vld [vmem:[%s5619_s3 + $0x558] sm:$0xff]  }
 0x16a   : > { %4011 = vmatpush3.bf16.msra.mxu1 %v4393_v59  ;;  %v4445_v59 = vld [vmem:[%s5619_s3 + $0x5a0] sm:$0xff]  }
 0x16b   : > { %4012 = vmatprep.subr.bf16.mxu1 %v4396_v60  ;;  %v4448_v60 = vld [vmem:[%s5619_s3 + $0x5d8] sm:$0xff]  }
 0x16c   : > { %3991 = vmatpush3.bf16.msra.mxu0 %v4395_v61  ;;  %v4447_v61 = vld [vmem:[%s5619_s3 + $0x518] sm:$0xff]  }
 0x16d   : > { %4020 = vmatprep.subr.bf16.mxu0 %v4398_v62  ;;  %v4450_v62 = vld [vmem:[%s5619_s3 + $0x550] sm:$0xff]  }
 0x16e   : > { %4013 = vmatpush3.bf16.msra.mxu1 %v4397_v63  ;;  %v4449_v63 = vld [vmem:[%s5619_s3 + $0x598] sm:$0xff]  }
 0x16f   : > { %3006 = vmatmul.mubr.bf16.vlgmr.msra.gmra.mxu0 %v644_v2  ;;  %4042 = vmatprep.subr.bf16.mxu1 %v4400_v0  ;;  %v4452_v0 = vld [vmem:[%s5619_s3 + $0x5d0] sm:$0xff]   ;;  %v4454_v2 = vld [vmem:[%s5619_s3 + $0x548] sm:$0xff]  }
 0x170   : > { %4021 = vmatpush3.bf16.msra.mxu0 %v4399_v1  ;;  %3085 = vmatprep.mubr.bf16.mxu0 %v653_v4  ;;  %v4451_v1 = vld [vmem:[%s5619_s3 + $0x510] sm:$0xff]   ;;  %v4456_v4 = vld [vmem:[%s5619_s3 + $0x5c8] sm:$0xff]  }
 0x171   : > { %3046 = vmatmul.mubr.bf16.vlgmr.msra.gmra.mxu1 %v648_v6  ;;  %4022 = vmatprep.subr.bf16.mxu0 %v4402_v3  ;;  %v4453_v3 = vld [vmem:[%s5619_s3 + $0x590] sm:$0xff]   ;;  %v4458_v6 = vld [vmem:[%s5619_s3 + $0x540] sm:$0xff]  }
 0x172   : > { %4043 = vmatpush3.bf16.msra.mxu1 %v4401_v5  ;;  %3125 = vmatprep.mubr.bf16.mxu1 %v657_v8  ;;  %v4455_v5 = vld [vmem:[%s5619_s3 + $0x508] sm:$0xff]   ;;  %v4460_v8 = vld [vmem:[%s5619_s3 + $0x5c0] sm:$0xff]  }
 0x173   : > { %4044 = vmatprep.subr.bf16.mxu1 %v4404_v7  ;;  %v4457_v7 = vld [vmem:[%s5619_s3 + $0x588] sm:$0xff]  }
 0x174   : > { %4023 = vmatpush3.bf16.msra.mxu0 %v4403_v9  ;;  %v4459_v9 = vld [vmem:[%s5619_s3 + $0x500] sm:$0xff]  }
 0x175   : > { %4024 = vmatprep.subr.bf16.mxu0 %v4406_v10  ;;  %v4462_v10 = vld [vmem:[%s5619_s3 + $0x678] sm:$0xff]  }
 0x176   : > { %4045 = vmatpush3.bf16.msra.mxu1 %v4405_v11  ;;  %v4461_v11 = vld [vmem:[%s5619_s3 + $0x580] sm:$0xff]  }
 0x177   : > { %4046 = vmatprep.subr.bf16.mxu1 %v4408_v12  ;;  %v4464_v12 = vld [vmem:[%s5619_s3 + $0x6f8] sm:$0xff]  }
 0x178   : > { %4025 = vmatpush3.bf16.msra.mxu0 %v4407_v13  ;;  %v4463_v13 = vld [vmem:[%s5619_s3 + $0x638] sm:$0xff]  }
 0x179   : > { %4026 = vmatprep.subr.bf16.mxu0 %v4410_v14  ;;  %v660_v14 = vrot.slane %v4832_v15, 5 }
 0x17a   : > { %4047 = vmatpush3.bf16.msra.mxu1 %v4409_v17  ;;  %v4466_v17 = vld [vmem:[%s5619_s3 + $0x670] sm:$0xff]  }
 0x17b   : > { %4048 = vmatprep.subr.bf16.mxu1 %v4412_v19  ;;  %v669_v19 = vrot.slane %v4834_v16, 6 }
 0x17c   : > { %4027 = vmatpush3.bf16.msra.mxu0 %v4411_v20  ;;  %v4465_v20 = vld [vmem:[%s5619_s3 + $0x6b8] sm:$0xff]  }
 0x17d   : > { %4028 = vmatprep.subr.bf16.mxu0 %v4414_v21  ;;  %v664_v21 = vrot.slane %v4852_v22, 5 }
 0x17e   : > { %4049 = vmatpush3.bf16.msra.mxu1 %v4413_v23  ;;  %v4468_v23 = vld [vmem:[%s5619_s3 + $0x6f0] sm:$0xff]  }
 0x17f   : > { %4050 = vmatprep.subr.bf16.mxu1 %v4416_v24  ;;  %v673_v24 = vrot.slane %v4841_v18, 6 }
 0x180   : > { %4029 = vmatpush3.bf16.msra.mxu0 %v4415_v25  ;;  %v4467_v25 = vld [vmem:[%s5619_s3 + $0x630] sm:$0xff]  }
 0x181   : > { %4030 = vmatprep.subr.bf16.mxu0 %v4418_v26  ;;  %v4470_v26 = vld [vmem:[%s5619_s3 + $0x668] sm:$0xff]  }
 0x182   : > { %4051 = vmatpush3.bf16.msra.mxu1 %v4417_v27  ;;  %v4469_v27 = vld [vmem:[%s5619_s3 + $0x6b0] sm:$0xff]  }
 0x183   : > { %4052 = vmatprep.subr.bf16.mxu1 %v4420_v28  ;;  %v4472_v28 = vld [vmem:[%s5619_s3 + $0x6e8] sm:$0xff]  }
 0x184   : > { %4031 = vmatpush3.bf16.msra.mxu0 %v4419_v29  ;;  %v4471_v29 = vld [vmem:[%s5619_s3 + $0x628] sm:$0xff]  }
 0x185   : > { %4032 = vmatprep.subr.bf16.mxu0 %v4422_v30  ;;  %v4474_v30 = vld [vmem:[%s5619_s3 + $0x660] sm:$0xff]  }
 0x186   : > { %4053 = vmatpush3.bf16.msra.mxu1 %v4421_v31  ;;  %v4473_v31 = vld [vmem:[%s5619_s3 + $0x6a8] sm:$0xff]  }
 0x187   : > { %4054 = vmatprep.subr.bf16.mxu1 %v4424_v32  ;;  %v4476_v32 = vld [vmem:[%s5619_s3 + $0x6e0] sm:$0xff]  }
 0x188   : > { %4033 = vmatpush3.bf16.msra.mxu0 %v4423_v33  ;;  %v4475_v33 = vld [vmem:[%s5619_s3 + $0x620] sm:$0xff]  }
 0x189   : > { %4034 = vmatprep.subr.bf16.mxu0 %v4426_v34  ;;  %v4478_v34 = vld [vmem:[%s5619_s3 + $0x658] sm:$0xff]  }
 0x18a   : > { %4055 = vmatpush3.bf16.msra.mxu1 %v4425_v35  ;;  %v4477_v35 = vld [vmem:[%s5619_s3 + $0x6a0] sm:$0xff]  }
 0x18b   : > { %4056 = vmatprep.subr.bf16.mxu1 %v4428_v36  ;;  %v4480_v36 = vld [vmem:[%s5619_s3 + $0x6d8] sm:$0xff]  }
 0x18c   : > { %4035 = vmatpush3.bf16.msra.mxu0 %v4427_v37  ;;  %v4479_v37 = vld [vmem:[%s5619_s3 + $0x618] sm:$0xff]  }
 0x18d   : > { %4064 = vmatprep.subr.bf16.mxu0 %v4430_v38  ;;  %v4482_v38 = vld [vmem:[%s5619_s3 + $0x650] sm:$0xff]  }
 0x18e   : > { %4057 = vmatpush3.bf16.msra.mxu1 %v4429_v39  ;;  %v4481_v39 = vld [vmem:[%s5619_s3 + $0x698] sm:$0xff]  }
 0x18f   : > { %3086 = vmatmul.mubr.bf16.vlgmr.msra.gmra.mxu0 %v652_v42  ;;  %4086 = vmatprep.subr.bf16.mxu1 %v4432_v40  ;;  %v4484_v40 = vld [vmem:[%s5619_s3 + $0x6d0] sm:$0xff]   ;;  %v4486_v42 = vld [vmem:[%s5619_s3 + $0x648] sm:$0xff]  }
 0x190   : > { %4065 = vmatpush3.bf16.msra.mxu0 %v4431_v41  ;;  %3165 = vmatprep.mubr.bf16.mxu0 %v661_v44  ;;  %v4483_v41 = vld [vmem:[%s5619_s3 + $0x610] sm:$0xff]   ;;  %v4488_v44 = vld [vmem:[%s5619_s3 + $0x6c8] sm:$0xff]  }
 0x191   : > { %3126 = vmatmul.mubr.bf16.vlgmr.msra.gmra.mxu1 %v656_v46  ;;  %4066 = vmatprep.subr.bf16.mxu0 %v4434_v43  ;;  %v4485_v43 = vld [vmem:[%s5619_s3 + $0x690] sm:$0xff]   ;;  %v4490_v46 = vld [vmem:[%s5619_s3 + $0x640] sm:$0xff]  }
 0x192   : > { %4087 = vmatpush3.bf16.msra.mxu1 %v4433_v45  ;;  %3205 = vmatprep.mubr.bf16.mxu1 %v665_v48  ;;  %v4487_v45 = vld [vmem:[%s5619_s3 + $0x608] sm:$0xff]   ;;  %v4492_v48 = vld [vmem:[%s5619_s3 + $0x6c0] sm:$0xff]  }
 0x193   : > { %4088 = vmatprep.subr.bf16.mxu1 %v4436_v47  ;;  %v4489_v47 = vld [vmem:[%s5619_s3 + $0x688] sm:$0xff]  }
 0x194   : > { %4067 = vmatpush3.bf16.msra.mxu0 %v4435_v49  ;;  %v4491_v49 = vld [vmem:[%s5619_s3 + $0x600] sm:$0xff]  }
 0x195   : > { %4068 = vmatprep.subr.bf16.mxu0 %v4438_v50  ;;  %v4494_v50 = vld [vmem:[%s5619_s3 + $0x778] sm:$0xff]  }
 0x196   : > { %4089 = vmatpush3.bf16.msra.mxu1 %v4437_v51  ;;  %v4493_v51 = vld [vmem:[%s5619_s3 + $0x680] sm:$0xff]  }
 0x197   : > { %4090 = vmatprep.subr.bf16.mxu1 %v4440_v52  ;;  %v4496_v52 = vld [vmem:[%s5619_s3 + $0x7f8] sm:$0xff]  }
 0x198   : > { %4069 = vmatpush3.bf16.msra.mxu0 %v4439_v53  ;;  %v4495_v53 = vld [vmem:[%s5619_s3 + $0x738] sm:$0xff]  }
 0x199   : > { %4070 = vmatprep.subr.bf16.mxu0 %v4442_v54  ;;  %v668_v54 = vrot.slane %v4832_v15, 6 }
 0x19a   : > { %4091 = vmatpush3.bf16.msra.mxu1 %v4441_v55  ;;  %v4498_v55 = vld [vmem:[%s5619_s3 + $0x770] sm:$0xff]  }
 0x19b   : > { %4092 = vmatprep.subr.bf16.mxu1 %v4444_v56  ;;  %v677_v56 = vrot.slane %v4834_v16, 7  ;;  %v4499_v16 = vld [vmem:[%s5619_s3 + $0x730] sm:$0xff]  }
 0x19c   : > { %4071 = vmatpush3.bf16.msra.mxu0 %v4443_v57  ;;  %v4497_v57 = vld [vmem:[%s5619_s3 + $0x7b8] sm:$0xff]  }
 0x19d   : > { %4072 = vmatprep.subr.bf16.mxu0 %v4446_v58 }
 0x19e   : > { %4093 = vmatpush3.bf16.msra.mxu1 %v4445_v59  ;;  %v672_v59 = vrot.slane %v4852_v22, 6 }
 0x19f   : > { %4094 = vmatprep.subr.bf16.mxu1 %v4448_v60  ;;  %v4500_v60 = vld [vmem:[%s5619_s3 + $0x7f0] sm:$0xff]  }
 0x1a0   : > { %4073 = vmatpush3.bf16.msra.mxu0 %v4447_v61  ;;  %v681_v61 = vrot.slane %v4841_v18, 7  ;;  %v4501_v18 = vld [vmem:[%s5619_s3 + $0x7b0] sm:$0xff]  }
 0x1a1   : > { %4074 = vmatprep.subr.bf16.mxu0 %v4450_v62  ;;  %v1196_v62 = vld [vmem:[%s5620_s4] sm:$0x1] }
 0x1a2   : > { %4095 = vmatpush3.bf16.msra.mxu1 %v4449_v63 }
 0x1a3   : > { %4096 = vmatprep.subr.bf16.mxu1 %v4452_v0 }
 0x1a4   : > { %4075 = vmatpush3.bf16.msra.mxu0 %v4451_v1  ;;  %v4502_v1 = vld [vmem:[%s5619_s3 + $0x768] sm:$0xff]  }
 0x1a5   : > { %4076 = vmatprep.subr.bf16.mxu0 %v4454_v2 }
 0x1a6   : > { %4097 = vmatpush3.bf16.msra.mxu1 %v4453_v3 }
 0x1a7   : > { %4098 = vmatprep.subr.bf16.mxu1 %v4456_v4 }
 0x1a8   : > { %4077 = vmatpush3.bf16.msra.mxu0 %v4455_v5  ;;  %v4504_v5 = vld [vmem:[%s5619_s3 + $0x7e8] sm:$0xff]  }
 0x1a9   : > { %4078 = vmatprep.subr.bf16.mxu0 %v4458_v6 }
 0x1aa   : > { %4099 = vmatpush3.bf16.msra.mxu1 %v4457_v7 }
 0x1ab   : > { %4100 = vmatprep.subr.bf16.mxu1 %v4460_v8  ;;  %v4503_v8 = vld [vmem:[%s5619_s3 + $0x728] sm:$0xff]  }
 0x1ac   : > { %4079 = vmatpush3.bf16.msra.mxu0 %v4459_v9 }
 0x1ad   : > { %4108 = vmatprep.subr.bf16.mxu0 %v4462_v10 }
 0x1ae   : > { %4101 = vmatpush3.bf16.msra.mxu1 %v4461_v11  ;;  %v4506_v11 = vld [vmem:[%s5619_s3 + $0x760] sm:$0xff]  }
 0x1af   : > { %3166 = vmatmul.mubr.bf16.vlgmr.msra.gmra.mxu0 %v660_v14  ;;  %4130 = vmatprep.subr.bf16.mxu1 %v4464_v12 }
 0x1b0   : > { %4109 = vmatpush3.bf16.msra.mxu0 %v4463_v13  ;;  %3245 = vmatprep.mubr.bf16.mxu0 %v669_v19  ;;  %v4505_v13 = vld [vmem:[%s5619_s3 + $0x7a8] sm:$0xff]   ;;  %v4507_v19 = vld [vmem:[%s5619_s3 + $0x720] sm:$0xff]  }
 0x1b1   : > { %3206 = vmatmul.mubr.bf16.vlgmr.msra.gmra.mxu1 %v664_v21  ;;  %4110 = vmatprep.subr.bf16.mxu0 %v4466_v17  ;;  %v4508_v17 = vld [vmem:[%s5619_s3 + $0x7e0] sm:$0xff]  }
 0x1b2   : > { %4131 = vmatpush3.bf16.msra.mxu1 %v4465_v20  ;;  %3285 = vmatprep.mubr.bf16.mxu1 %v673_v24  ;;  %v4510_v20 = vld [vmem:[%s5619_s3 + $0x758] sm:$0xff]   ;;  %v4509_v21 = vld [vmem:[%s5619_s3 + $0x7a0] sm:$0xff]  }
 0x1b3   : > { %4132 = vmatprep.subr.bf16.mxu1 %v4468_v23  ;;  %v4512_v23 = vld [vmem:[%s5619_s3 + $0x7d8] sm:$0xff]  }
 0x1b4   : > { %4111 = vmatpush3.bf16.msra.mxu0 %v4467_v25  ;;  %v4511_v24 = vld [vmem:[%s5619_s3 + $0x718] sm:$0xff]   ;;  %v4514_v25 = vld [vmem:[%s5619_s3 + $0x750] sm:$0xff]  }
 0x1b5   : > { %4112 = vmatprep.subr.bf16.mxu0 %v4470_v26  ;;  %v4513_v26 = vld [vmem:[%s5619_s3 + $0x798] sm:$0xff]  }
 0x1b6   : > { %4133 = vmatpush3.bf16.msra.mxu1 %v4469_v27  ;;  %v4516_v27 = vld [vmem:[%s5619_s3 + $0x7d0] sm:$0xff]  }
 0x1b7   : > { %4134 = vmatprep.subr.bf16.mxu1 %v4472_v28  ;;  %v4515_v28 = vld [vmem:[%s5619_s3 + $0x710] sm:$0xff]  }
 0x1b8   : > { %4113 = vmatpush3.bf16.msra.mxu0 %v4471_v29  ;;  %v4518_v29 = vld [vmem:[%s5619_s3 + $0x748] sm:$0xff]  }
 0x1b9   : > { %4114 = vmatprep.subr.bf16.mxu0 %v4474_v30  ;;  %v4517_v30 = vld [vmem:[%s5619_s3 + $0x790] sm:$0xff]  }
 0x1ba   : > { %4135 = vmatpush3.bf16.msra.mxu1 %v4473_v31  ;;  %v4520_v31 = vld [vmem:[%s5619_s3 + $0x7c8] sm:$0xff]  }
 0x1bb   : > { %4136 = vmatprep.subr.bf16.mxu1 %v4476_v32  ;;  %v4519_v32 = vld [vmem:[%s5619_s3 + $0x708] sm:$0xff]  }
 0x1bc   : > { %4115 = vmatpush3.bf16.msra.mxu0 %v4475_v33  ;;  %v4522_v33 = vld [vmem:[%s5619_s3 + $0x740] sm:$0xff]  }
 0x1bd   : > { %4116 = vmatprep.subr.bf16.mxu0 %v4478_v34  ;;  %v4521_v34 = vld [vmem:[%s5619_s3 + $0x788] sm:$0xff]  }
 0x1be   : > { %4137 = vmatpush3.bf16.msra.mxu1 %v4477_v35  ;;  %v4524_v35 = vld [vmem:[%s5619_s3 + $0x7c0] sm:$0xff]  }
 0x1bf   : > { %4138 = vmatprep.subr.bf16.mxu1 %v4480_v36  ;;  %v4523_v36 = vld [vmem:[%s5619_s3 + $0x700] sm:$0xff]  }
 0x1c0   : > { %4117 = vmatpush3.bf16.msra.mxu0 %v4479_v37  ;;  %v4525_v37 = vld [vmem:[%s5619_s3 + $0x780] sm:$0xff]  }
 0x1c1   : > { %4118 = vmatprep.subr.bf16.mxu0 %v4482_v38  ;;  %v676_v38 = vrot.slane %v4832_v15, 7 }
 0x1c2   : > { %4139 = vmatpush3.bf16.msra.mxu1 %v4481_v39 }
 0x1c3   : > { %4140 = vmatprep.subr.bf16.mxu1 %v4484_v40  ;;  %v680_v40 = vrot.slane %v4852_v22, 7 }
 0x1c4   : > { %4119 = vmatpush3.bf16.msra.mxu0 %v4483_v41 }
 0x1c5   : > { %4120 = vmatprep.subr.bf16.mxu0 %v4486_v42 }
 0x1c6   : > { %4141 = vmatpush3.bf16.msra.mxu1 %v4485_v43 }
 0x1c7   : > { %4142 = vmatprep.subr.bf16.mxu1 %v4488_v44 }
 0x1c8   : > { %4121 = vmatpush3.bf16.msra.mxu0 %v4487_v45 }
 0x1c9   : > { %4122 = vmatprep.subr.bf16.mxu0 %v4490_v46 }
 0x1ca   : > { %4143 = vmatpush3.bf16.msra.mxu1 %v4489_v47 }
 0x1cb   : > { %4144 = vmatprep.subr.bf16.mxu1 %v4492_v48 }
 0x1cc   : > { %4123 = vmatpush3.bf16.msra.mxu0 %v4491_v49 }
 0x1cd   : > { %4152 = vmatprep.subr.bf16.mxu0 %v4494_v50 }
 0x1ce   : > { %4145 = vmatpush3.bf16.msra.mxu1 %v4493_v51 }
 0x1cf   : > { %3246 = vmatmul.mubr.bf16.vlgmr.msra.gmra.mxu0 %v668_v54  ;;  %v3860_v58 = vpop.f32.mrf.mxu0  ;;  %4174 = vmatprep.subr.bf16.mxu1 %v4496_v52 }
 0x1d0   : > { %4153 = vmatpush3.bf16.msra.mxu0 %v4495_v53  ;;  %3325 = vmatprep.mubr.bf16.mxu0 %v677_v56 }
 0x1d1   : > { %3286 = vmatmul.mubr.bf16.vlgmr.msra.gmra.mxu1 %v672_v59  ;;  %v3861_v63 = vpop.f32.mrf.mxu0  ;;  %v3882_v0 = vpop.f32.mrf.mxu1  ;;  %4154 = vmatprep.subr.bf16.mxu0 %v4498_v55 }
 0x1d2   : > { %v3862_v2 = vadd.f32 %v3861_v63, %v3860_v58  ;;  %4175 = vmatpush3.bf16.msra.mxu1 %v4497_v57  ;;  %3365 = vmatprep.mubr.bf16.mxu1 %v681_v61  ;;  %v4527_v63 = vld [vmem:[%s5621_s5 + $0x30] sm:$0xff]  }
 0x1d3   : > { %v3863_v3 = vpop.f32.mrf.mxu0  ;;  %v3883_v4 = vpop.f32.mrf.mxu1  ;;  %4176 = vmatprep.subr.bf16.mxu1 %v4500_v60 }
 0x1d4   : > { %v2768_v6 = vadd.f32 %v3862_v2, %v1196_v62  ;;  %v3884_v7 = vadd.f32 %v3883_v4, %v3882_v0  ;;  %4155 = vmatpush3.bf16.msra.mxu0 %v4499_v16  ;;  %v4526_v16 = vld [vmem:[%s5621_s5 + $0x38] sm:$0xff]   ;;  %v4598_v62 = vmov 0.0   ;;  %v4528_v0 = vld [vmem:[%s5621_s5 + $0x28] sm:$0xff]  }
 0x1d5   : > { %v3864_v9 = vpop.f32.mrf.mxu0  ;;  %v3885_v10 = vpop.f32.mrf.mxu1  ;;  %4156 = vmatprep.subr.bf16.mxu0 %v4502_v1  ;;  %v4529_v1 = vld [vmem:[%s5621_s5 + $0x20] sm:$0xff]   ;;  %v4530_v2 = vld [vmem:[%s5621_s5 + $0x18] sm:$0xff]  }
 0x1d6   : > { %v2808_v12 = vadd.f32 %v3884_v7, %v2768_v6  ;;  %4177 = vmatpush3.bf16.msra.mxu1 %v4501_v18  ;;  %v4531_v10 = vld [vmem:[%s5621_s5 + $0x10] sm:$0xff]  }
 0x1d7   : > { %v3886_v14 = vpop.f32.mrf.mxu1  ;;  %4178 = vmatprep.subr.bf16.mxu1 %v4504_v5 }
 0x1d8   : > { %4157 = vmatpush3.bf16.msra.mxu0 %v4503_v8 }
 0x1d9   : > { %4158 = vmatprep.subr.bf16.mxu0 %v4506_v11 }
 0x1da   : > { %4179 = vmatpush3.bf16.msra.mxu1 %v4505_v13 }
 0x1db   : > { %4180 = vmatprep.subr.bf16.mxu1 %v4508_v17  ;;  %v4532_v17 = vld [vmem:[%s5621_s5 + $0x8] sm:$0xff]  }
 0x1dc   : > { %4159 = vmatpush3.bf16.msra.mxu0 %v4507_v19  ;;  %v4533_v19 = vld [vmem:[%s5621_s5] sm:$0xff]  }
 0x1dd   : > { %4160 = vmatprep.subr.bf16.mxu0 %v4510_v20 }
 0x1de   : > { %4181 = vmatpush3.bf16.msra.mxu1 %v4509_v21 }
 0x1df   : > { %4182 = vmatprep.subr.bf16.mxu1 %v4512_v23 }
 0x1e0   : > { %4161 = vmatpush3.bf16.msra.mxu0 %v4511_v24 }
 0x1e1   : > { %4162 = vmatprep.subr.bf16.mxu0 %v4514_v25 }
 0x1e2   : > { %4183 = vmatpush3.bf16.msra.mxu1 %v4513_v26 }
 0x1e3   : > { %4184 = vmatprep.subr.bf16.mxu1 %v4516_v27 }
 0x1e4   : > { %4163 = vmatpush3.bf16.msra.mxu0 %v4515_v28 }
 0x1e5   : > { %4164 = vmatprep.subr.bf16.mxu0 %v4518_v29 }
 0x1e6   : > { %4185 = vmatpush3.bf16.msra.mxu1 %v4517_v30 }
 0x1e7   : > { %4186 = vmatprep.subr.bf16.mxu1 %v4520_v31 }
 0x1e8   : > { %4165 = vmatpush3.bf16.msra.mxu0 %v4519_v32 }
 0x1e9   : > { %4166 = vmatprep.subr.bf16.mxu0 %v4522_v33 }
 0x1ea   : > { %4187 = vmatpush3.bf16.msra.mxu1 %v4521_v34 }
 0x1eb   : > { %4188 = vmatprep.subr.bf16.mxu1 %v4524_v35 }
 0x1ec   : > { %4167 = vmatpush3.bf16.msra.mxu0 %v4523_v36 }
 0x1ed   : > { %4205 = vmatprep.subr.bf16.mxu0 %v4598_v62 }
 0x1ee   : > { %4189 = vmatpush3.bf16.msra.mxu1 %v4525_v37 }
 0x1ef   : > { %v3904_v39 = vpop.f32.mrf.mxu0  ;;  %3326 = vmatmul.mubr.bf16.vlgmr.msra.gmra.mxu0 %v676_v38 }
 0x1f0   : > { %4206 = vmatpush3.bf16.msra.mxu0 %v4526_v16  ;;  %4221 = vmatprep.mubr.msk.bf16.mxu0 %vm4599_vm3, %v4598_v62 }
 0x1f1   : > { %v3905_v41 = vpop.f32.mrf.mxu0  ;;  %v3926_v42 = vpop.f32.mrf.mxu1  ;;  %3366 = vmatmul.mubr.bf16.vlgmr.msra.gmra.mxu1 %v680_v40  ;;  %4207 = vmatprep.subr.bf16.mxu0 %v4598_v62 }
 0x1f2   : > { %v3906_v43 = vadd.f32 %v3905_v41, %v3904_v39 }
 0x1f3   : > { %v3907_v44 = vpop.f32.mrf.mxu0  ;;  %v3927_v45 = vpop.f32.mrf.mxu1 }
 0x1f4   : > { %v2848_v46 = vadd.f32 %v3906_v43, %v2808_v12  ;;  %v3928_v47 = vadd.f32 %v3927_v45, %v3926_v42  ;;  %4208 = vmatpush3.bf16.msra.mxu0 %v4527_v63 }
 0x1f5   : > { %v3908_v48 = vpop.f32.mrf.mxu0  ;;  %v3929_v49 = vpop.f32.mrf.mxu1  ;;  %4209 = vmatprep.subr.bf16.mxu0 %v4598_v62 }
 0x1f6   : > { %v2888_v50 = vadd.f32 %v3928_v47, %v2848_v46 }
 0x1f7   : > { %v3930_v51 = vpop.f32.mrf.mxu1 }
 0x1f8   : > { %4210 = vmatpush3.bf16.msra.mxu0 %v4528_v0 }
 0x1f9   : > { %4211 = vmatprep.subr.bf16.mxu0 %v4598_v62 }
 0x1fc   : > { %4212 = vmatpush3.bf16.msra.mxu0 %v4529_v1 }
 0x1fd   : > { %4213 = vmatprep.subr.bf16.mxu0 %v4598_v62 }
 0x200   : > { %4214 = vmatpush3.bf16.msra.mxu0 %v4530_v2 }
 0x201   : > { %4215 = vmatprep.subr.bf16.mxu0 %v4598_v62 }
 0x204   : > { %4216 = vmatpush3.bf16.msra.mxu0 %v4531_v10 }
 0x205   : > { %4217 = vmatprep.subr.bf16.mxu0 %v4598_v62 }
 0x208   : > { %4218 = vmatpush3.bf16.msra.mxu0 %v4532_v17 }
 0x209   : > { %4219 = vmatprep.subr.bf16.mxu0 %v4598_v62 }
 0x20c   : > { %4220 = vmatpush3.bf16.msra.mxu0 %v4533_v19 }
 0x20f   : > { %v3948_v52 = vpop.f32.mrf.mxu0 }
 0x211   : > { %v3949_v53 = vpop.f32.mrf.mxu0  ;;  %v3970_v15 = vpop.f32.mrf.mxu1 }
 0x212   : > { %v3950_v54 = vadd.f32 %v3949_v53, %v3948_v52 }
 0x213   : > { %v3951_v55 = vpop.f32.mrf.mxu0  ;;  %v3971_v56 = vpop.f32.mrf.mxu1 }
 0x214   : > { %v2928_v57 = vadd.f32 %v3950_v54, %v2888_v50  ;;  %v3972_v22 = vadd.f32 %v3971_v56, %v3970_v15 }
 0x215   : > { %v3952_v58 = vpop.f32.mrf.mxu0  ;;  %v3973_v59 = vpop.f32.mrf.mxu1 }
 0x216   : > { %v2968_v60 = vadd.f32 %v3972_v22, %v2928_v57 }
 0x217   : > { %v3974_v61 = vpop.f32.mrf.mxu1 }
 0x22f   : > { %v3992_v18 = vpop.f32.mrf.mxu0 }
 0x231   : > { %v3993_v3 = vpop.f32.mrf.mxu0  ;;  %v4014_v4 = vpop.f32.mrf.mxu1 }
 0x232   : > { %v3994_v5 = vadd.f32 %v3993_v3, %v3992_v18  ;;  %v3391_v3 = vld [vmem:[%s5622_s6] sm:$0x1] }
 0x233   : > { %v3995_v6 = vpop.f32.mrf.mxu0  ;;  %v4015_v7 = vpop.f32.mrf.mxu1 }
 0x234   : > { %v3008_v8 = vadd.f32 %v3994_v5, %v2968_v60  ;;  %v4016_v9 = vadd.f32 %v4015_v7, %v4014_v4 }
 0x235   : > { %v3996_v11 = vpop.f32.mrf.mxu0  ;;  %v4017_v12 = vpop.f32.mrf.mxu1 }
 0x236   : > { %v3048_v13 = vadd.f32 %v4016_v9, %v3008_v8 }
 0x237   : > { %v4018_v14 = vpop.f32.mrf.mxu1 }
 0x24f   : > { %v4036_v20 = vpop.f32.mrf.mxu0 }
 0x251   : > { %v4037_v21 = vpop.f32.mrf.mxu0  ;;  %v4058_v23 = vpop.f32.mrf.mxu1 }
 0x252   : > { %v4038_v24 = vadd.f32 %v4037_v21, %v4036_v20 }
 0x253   : > { %v4039_v25 = vpop.f32.mrf.mxu0  ;;  %v4059_v26 = vpop.f32.mrf.mxu1 }
 0x254   : > { %v3088_v27 = vadd.f32 %v4038_v24, %v3048_v13  ;;  %v4060_v28 = vadd.f32 %v4059_v26, %v4058_v23 }
 0x255   : > { %v4040_v29 = vpop.f32.mrf.mxu0  ;;  %v4061_v30 = vpop.f32.mrf.mxu1 }
 0x256   : > { %v3128_v31 = vadd.f32 %v4060_v28, %v3088_v27 }
 0x257   : > { %v4062_v32 = vpop.f32.mrf.mxu1 }
 0x26f   : > { %v4080_v33 = vpop.f32.mrf.mxu0 }
 0x271   : > { %v4081_v34 = vpop.f32.mrf.mxu0  ;;  %v4102_v35 = vpop.f32.mrf.mxu1 }
 0x272   : > { %v4082_v49 = vadd.f32 %v4081_v34, %v4080_v33 }
 0x273   : > { %v4083_v36 = vpop.f32.mrf.mxu0  ;;  %v4103_v37 = vpop.f32.mrf.mxu1 }
 0x274   : > { %v3168_v50 = vadd.f32 %v4082_v49, %v3128_v31  ;;  %v4104_v51 = vadd.f32 %v4103_v37, %v4102_v35 }
 0x275   : > { %v4084_v38 = vpop.f32.mrf.mxu0  ;;  %v4105_v39 = vpop.f32.mrf.mxu1 }
 0x276   : > { %v3208_v53 = vadd.f32 %v4104_v51, %v3168_v50 }
 0x277   : > { %v4106_v40 = vpop.f32.mrf.mxu1 }
 0x28f   : > { %v4124_v41 = vpop.f32.mrf.mxu0 }
 0x291   : > { %v4125_v42 = vpop.f32.mrf.mxu0  ;;  %v4146_v43 = vpop.f32.mrf.mxu1 }
 0x292   : > { %v4126_v52 = vadd.f32 %v4125_v42, %v4124_v41 }
 0x293   : > { %v4127_v44 = vpop.f32.mrf.mxu0  ;;  %v4147_v45 = vpop.f32.mrf.mxu1 }
 0x294   : > { %v3248_v15 = vadd.f32 %v4126_v52, %v3208_v53  ;;  %v4148_v54 = vadd.f32 %v4147_v45, %v4146_v43 }
 0x295   : > { %v4128_v46 = vpop.f32.mrf.mxu0  ;;  %v4149_v47 = vpop.f32.mrf.mxu1 }
 0x296   : > { %v3288_v22 = vadd.f32 %v4148_v54, %v3248_v15 }
 0x297   : > { %v4150_v48 = vpop.f32.mrf.mxu1 }
 0x2af   : > { %v4168_v55 = vpop.f32.mrf.mxu0 }
 0x2b1   : > { %v4169_v56 = vpop.f32.mrf.mxu0  ;;  %v4190_v57 = vpop.f32.mrf.mxu1 }
 0x2b2   : > { %v4170_v58 = vadd.f32 %v4169_v56, %v4168_v55 }
 0x2b3   : > { %v4171_v59 = vpop.f32.mrf.mxu0  ;;  %v4191_v60 = vpop.f32.mrf.mxu1 }
 0x2b4   : > { %v3328_v61 = vadd.f32 %v4170_v58, %v3288_v22  ;;  %v4192_v16 = vadd.f32 %v4191_v60, %v4190_v57 }
 0x2b5   : > { %v4172_v62 = vpop.f32.mrf.mxu0  ;;  %v4193_v63 = vpop.f32.mrf.mxu1 }
 0x2b6   : > { %v3368_v0 = vadd.f32 %v4192_v16, %v3328_v61 }
 0x2b7   : > { %v4194_v1 = vpop.f32.mrf.mxu1 }
 0x2b8   : > { %v3373_v2 = vmax.f32 %v3368_v0, 0.0 }
 0x2ba   : > { %v3374_v18 = vpack.c.bf16 %v3373_v2, %v3373_v2 }
 0x2bc   : > { %4222 = vmatmul.mubr.bf16.vlgmr.msra.gmra.mxu0 %v3374_v18 }
 0x37c   : > { %v3474_v4 = vpop.f32.mrf.mxu0 }
 0x37d   : > { %v3475_v5 = vadd.f32 %v3474_v4, %v3391_v3 }
 0x37e   : > { %v4223_v6 = vpop.f32.mrf.mxu0 }
 0x37f   : > { %3480 = vst [vmem:[%s270_s9] sm:$0x1] %v3475_v5 }
 0x380   : > { %v3477_v7 = vpop.f32.mrf.mxu0 }
 0x381   : > { %4547 = shalt.err (!%p4544_p3)
}
 0x382   : > { %s4548_s21 = scalar_lea.hbm %s5575_s16, 16  ;;  %s4552_s29 = scalar_lea.hbm %s5623_s7, 32 }
 0x383   : > { %p4549_p4 = scmp.ne.s32.totalorder %s5575_s16, %s4548_s21  ;;  %p4553_p9 = scmp.lt.s32.totalorder %s5575_s16, %s5623_s7 }
 0x384   : > { %p4554_p10 = scmp.lt.s32.totalorder %s4552_s29, %s4548_s21 }
 0x385   : > { %p4550_p7 = pnand %p4549_p4, %p4679_p5 }
 0x386   : > { %p4555_p11 = por %p4554_p10, %p4553_p9 }
 0x387   : > { %p4551_p8 = pneg %p4550_p7 }
 0x389   : > { %p4556_p12 = pnand %p4555_p11, %p4551_p8 }
 0x38b   : > { %4559 = shalt.err (!%p4556_p12)
}
 0x38c   : > { %4225 = dma.vmem_to_hbm [thread:$0]  (%p4679_p5), %s5577_s13, 16, %s5575_s16, %s3482_s17   ;;  %v4224_v8 = vpop.f32.mrf.mxu0 }
 0x38d PF: > { %p4231_p13 = scmp.ge.s32.totalorder %s4594_s27, 2  ;;  %s3506_s14 = sand.u32 1, %s4582_s24  }
 0x38e   : > { %s3507_s15 = scalar_lea.sflag [#allocation3], %s3506_s14 }
 0x38f   : > { %p4228_p0 = pnand %p4231_p13, %p4683_p6 }
 0x391   : > { %p4229_p1 = pneg %p4228_p0 }
 0x393   : > { %4577 = dma.done.wait (%p4229_p1), %s3507_s15, 16  }
 0x394   : > { %4579 = vsyncadd (%p4229_p1), %s3507_s15, 4294967280  ;;  %p17_p2 = scmp.ge.s32.totalorder %s4666_s30, 4   ;;  %s5626_s24 = smov %s4586_s25 }
 0x395   : > { %s5627_s25 = smov %s4590_s26  ;;  %s5628_s26 = smov %s4677_s10 }
 0x396   : > { %s5629_s27 = smov %s4666_s30  ;;  %19 = sbr.rel (!%p17_p2) target bundleno = 3 (0x3), region = 83 }
 0x39b   :  { %3511 = vsyncpa [#allocation3], 1 }
 0x39c   :  { %3513 = vsyncpa [#allocation3 + $0x1], 1 }

</bundles_post_ra>
